<compile_context>
chip_gen: v5e
topology: v5e:2x2
jax: 0.10.0
libtpu: 0.0.40
codegen_flags: <defaults>
</compile_context>

<pallas_src>
import functools

import jax
import jax.numpy as jnp
from jax.experimental import pallas as pl
from jax.experimental.pallas import tpu as pltpu


def _layernorm_cols(x, gamma, beta, eps=1e-5):
    """PyTorch nn.LayerNorm semantics, normalizing over the channel (sublane) axis
    of an (H, N) tile; gamma/beta are (H, 1)."""
    mean = jnp.mean(x, axis=0, keepdims=True)
    var = jnp.mean(jnp.square(x - mean), axis=0, keepdims=True)
    return (x - mean) * jax.lax.rsqrt(var + eps) * gamma + beta


def _layernorm_rows(x, gamma, beta, eps=1e-5):
    """Same, normalizing over the last axis (reference layout)."""
    mean = jnp.mean(x, axis=-1, keepdims=True)
    var = jnp.mean(jnp.square(x - mean), axis=-1, keepdims=True)
    return (x - mean) * jax.lax.rsqrt(var + eps) * gamma + beta


def _flownet_kernel(C1,
                    # inputs (channels on sublanes, time on lanes)
                    x_ref, cond_ref,
                    wpt_ref, wpb_ref, bpt_ref, bpb_ref,
                    w1z_ref, w1c_ref, b1_ref, g1_ref, be1_ref,
                    w2_ref, b2_ref, g2_ref, be2_ref,
                    w3s_ref, b3s_ref, w3c_ref, b3c_ref,
                    # outputs (resident across the K grid axis)
                    z_ref, coup_ref):
    k = pl.program_id(1)

    @pl.when(k == 0)
    def _init():
        z_ref[...] = x_ref[...]
        coup_ref[...] = jnp.zeros_like(coup_ref)

    z = z_ref[...]                       # (C, TBT)
    cond = cond_ref[...]                 # (Ncond, TBT)

    # ---- ActNorm (folded into the weights host-side) + invertible 1x1 conv.
    # Row-split of the folded weight so z1/z2 come out directly (no value slicing).
    z1 = jnp.dot(wpt_ref[...], z, preferred_element_type=jnp.float32) + bpt_ref[...]
    z2 = jnp.dot(wpb_ref[...], z, preferred_element_type=jnp.float32) + bpb_ref[...]

    # ---- affine coupling, FF network (no concat: w1 split into z / cond parts) ----
    h = (jnp.dot(w1z_ref[...], z1, preferred_element_type=jnp.float32)
         + jnp.dot(w1c_ref[...], cond, preferred_element_type=jnp.float32)
         + b1_ref[...])
    h = jnp.maximum(_layernorm_cols(h, g1_ref[...], be1_ref[...]), 0.0)
    h = jnp.dot(w2_ref[...], h, preferred_element_type=jnp.float32) + b2_ref[...]
    h = jnp.maximum(_layernorm_cols(h, g2_ref[...], be2_ref[...]), 0.0)

    # LinearZeroInit split into shift / scale halves ('cross') in the wrapper;
    # the +2.0 offset is folded into b3c.
    shift = jnp.dot(w3s_ref[...], h, preferred_element_type=jnp.float32) + b3s_ref[...]
    scale = jax.nn.sigmoid(
        jnp.dot(w3c_ref[...], h, preferred_element_type=jnp.float32) + b3c_ref[...]
    ) + 1e-6

    z2 = (z2 + shift) * scale

    # Lane-dense stores straight into the resident output (sublane-sliced only).
    z_ref[:C1, :] = z1
    z_ref[C1:, :] = z2
    # Per-timestep coupling log-det contribution (sublane reduce, lane-dense store);
    # the per-batch reduction over T happens in the wrapper.
    coup_ref[...] = coup_ref[...] + jnp.sum(jnp.log(scale), axis=0, keepdims=True)


def flownet_forward(x_bct, cond_bct, params, tbt=None):
    """Forward (reverse=False) of FlowNet.  x_bct:(B,C,T), cond_bct:(B,Ncond,T)."""
    B, C, T = x_bct.shape
    Ncond = cond_bct.shape[1]
    K = params['w'].shape[0]
    H = params['w1'].shape[2]
    C1, C2 = C // 2, C - C // 2
    BT = B * T

    if tbt is None:
        tbt = next((t for t in (1024, 512, 256, 128) if BT % t == 0), BT)
    assert BT % tbt == 0

    f32 = jnp.float32
    # Channels-on-sublane / time-on-lane layout (lane dim = B*T).
    x2d = jnp.transpose(x_bct.astype(f32), (1, 0, 2)).reshape(C, BT)
    cond2d = jnp.transpose(cond_bct.astype(f32), (1, 0, 2)).reshape(Ncond, BT)

    # Fold ActNorm into the 1x1 conv (pure parameter plumbing):
    #   W @ ((z + b) * e)  ==  (W * e) @ z + (W * e) @ b ,  e = exp(logs).
    e = jnp.exp(params['alogs'].astype(f32))                                # (K,1,C)
    Wp = params['w'].astype(f32) * e                                        # (K,C,C)
    bp = jnp.einsum('koc,kc->ko', Wp, params['ab'].astype(f32)[:, 0, :])    # (K,C)
    wpt, wpb = Wp[:, :C1, :], Wp[:, C1:, :]
    bpt, bpb = bp[:, :C1, None], bp[:, C1:, None]

    def t_(a):  # (K, m, n) -> (K, n, m), f32
        return jnp.transpose(a.astype(f32), (0, 2, 1))

    w1, b1, g1, be1 = params['w1'], params['b1'], params['g1'], params['be1']
    w2, b2, g2, be2 = params['w2'], params['b2'], params['g2'], params['be2']
    w3, b3 = params['w3'], params['b3']

    w1z, w1c = t_(w1[:, :C1, :]), t_(w1[:, C1:, :])          # (K,H,C1), (K,H,Ncond)
    b1t, g1t, be1t = t_(b1), t_(g1), t_(be1)                 # (K,H,1)
    w2t = t_(w2)                                             # (K,H,H)
    b2t, g2t, be2t = t_(b2), t_(g2), t_(be2)
    # thops.split_feature(h, 'cross'): even output columns -> shift, odd -> scale.
    w3s, w3c = t_(w3[:, :, 0::2]), t_(w3[:, :, 1::2])        # (K,C2,H)
    b3s = t_(b3[:, :, 0::2])                                 # (K,C2,1)
    b3c = t_(b3[:, :, 1::2]) + 2.0                           # fold the +2.0 offset

    # Data-independent logdet terms (per batch element, identical), host-side glue:
    #   sum_k (sum(alogs_k) + slogdet(W_k)) * T
    dlog = (jnp.sum(params['alogs'].astype(f32))
            + jnp.sum(jnp.linalg.slogdet(params['w'].astype(f32))[1])) * float(T)

    def act(nrows):     # activation tile; block index constant over k
        return pl.BlockSpec((nrows, tbt), lambda bt, k: (0, bt))

    def par(shape):     # per-flow-step parameter; leading K axis squeezed out
        return pl.BlockSpec((None,) + shape,
                            lambda bt, k, _n=len(shape): (k,) + (0,) * _n)

    grid_spec = pltpu.PrefetchScalarGridSpec(
        num_scalar_prefetch=0,
        grid=(BT // tbt, K),
        in_specs=[
            act(C), act(Ncond),
            par((C1, C)), par((C2, C)), par((C1, 1)), par((C2, 1)),
            par((H, C1)), par((H, Ncond)), par((H, 1)), par((H, 1)), par((H, 1)),
            par((H, H)), par((H, 1)), par((H, 1)), par((H, 1)),
            par((C2, H)), par((C2, 1)), par((C2, H)), par((C2, 1)),
        ],
        out_specs=[
            act(C),      # z   (resident accumulator across K)
            act(1),      # per-timestep coupling log-scale sum (resident across K)
        ],
    )

    kernel = functools.partial(_flownet_kernel, C1)
    z2d, coup = pl.pallas_call(
        kernel,
        out_shape=(jax.ShapeDtypeStruct((C, BT), f32),
                   jax.ShapeDtypeStruct((1, BT), f32)),
        grid_spec=grid_spec,
        input_output_aliases={0: 0},     # x HBM buffer is reused for the z output
        compiler_params=pltpu.CompilerParams(
            dimension_semantics=("parallel", "arbitrary"),
            vmem_limit_bytes=32 * 1024 * 1024),
    )(x2d, cond2d,
      wpt, wpb, bpt, bpb,
      w1z, w1c, b1t, g1t, be1t,
      w2t, b2t, g2t, be2t,
      w3s, b3s, w3c, b3c)

    z_bct = jnp.transpose(z2d.reshape(C, B, T), (1, 0, 2))
    logdet = coup.reshape(B, T).sum(axis=1) + dlog
    return z_bct, logdet


def reference_forward(x_bct, cond_bct, params):
    """Pure-JAX mirror of the PyTorch forward (NCL layout), for verification."""
    z = x_bct.astype(jnp.float32)
    cond = cond_bct.astype(jnp.float32)
    B, C, T = z.shape
    C1, C2 = C // 2, C - C // 2
    K = params['w'].shape[0]
    logdet = jnp.zeros((B,), jnp.float32)
    for k in range(K):
        ab = params['ab'][k, 0]
        logs = params['alogs'][k, 0]
        z = (z + ab[None, :, None]) * jnp.exp(logs)[None, :, None]
        logdet = logdet + jnp.sum(logs) * T
        W = params['w'][k]
        z = jnp.einsum('oc,bct->bot', W, z)
        logdet = logdet + jnp.linalg.slogdet(W)[1] * T
        z1, z2 = z[:, :C1], z[:, C1:]
        zc = jnp.concatenate([z1, cond], axis=1)
        h = jnp.transpose(zc, (0, 2, 1))                       # (B, T, C1+Nc)
        h = h @ params['w1'][k] + params['b1'][k]
        h = jnp.maximum(_layernorm_rows(h, params['g1'][k], params['be1'][k]), 0.0)
        h = h @ params['w2'][k] + params['b2'][k]
        h = jnp.maximum(_layernorm_rows(h, params['g2'][k], params['be2'][k]), 0.0)
        h = h @ params['w3'][k] + params['b3'][k]              # (B, T, 2*C2)
        h = jnp.transpose(h, (0, 2, 1))                        # (B, 2*C2, T)
        shift = h[:, 0::2]
        scale = jax.nn.sigmoid(h[:, 1::2] + 2.0) + 1e-6
        z2 = (z2 + shift) * scale
        logdet = logdet + jnp.sum(jnp.log(scale), axis=(1, 2))
        z = jnp.concatenate([z1, z2], axis=1)
    return z, logdet


if __name__ == "__main__":
    # Small Glow-like config: num_joints=3 -> x_channels=9; seqlen=2 ->
    # cond_channels = 2*9*2 + 9 = 45; FF coupling net with H=64; K=4 flow steps.
    # B*T = 256 so the B*T axis is tiled into two lane-dense 128-column tiles.
    B, T = 4, 64
    C = 9
    Ncond = 45
    H, K = 64, 4
    C1, C2 = C // 2, C - C // 2

    key = jax.random.PRNGKey(0)
    ks = jax.random.split(key, 16)

    def rn(k, shape, scale=0.1):
        return scale * jax.random.normal(k, shape, jnp.float32)

    # Invertible 1x1 conv weights: orthogonal * positive diagonal -> well conditioned,
    # nonzero log|det|.
    qk, dk = jax.random.split(ks[0])
    q, _ = jnp.linalg.qr(jax.random.normal(qk, (K, C, C), jnp.float32))
    d = jnp.exp(0.1 * jax.random.normal(dk, (K, 1, C), jnp.float32))
    Ws = q * d

    # NOTE: ActNorm's data-dependent first-batch init and LinearZeroInit's zero init
    # are init-time details; deterministic random values fully exercise the forward.
    params = dict(
        ab=rn(ks[1], (K, 1, C)),
        alogs=rn(ks[2], (K, 1, C)),
        w=Ws,
        w1=rn(ks[3], (K, C1 + Ncond, H), 0.3),
        b1=rn(ks[4], (K, 1, H)),
        g1=1.0 + rn(ks[5], (K, 1, H)),
        be1=rn(ks[6], (K, 1, H)),
        w2=rn(ks[7], (K, H, H), 0.3),
        b2=rn(ks[8], (K, 1, H)),
        g2=1.0 + rn(ks[9], (K, 1, H)),
        be2=rn(ks[10], (K, 1, H)),
        w3=rn(ks[11], (K, H, 2 * C2), 0.05),
        b3=rn(ks[12], (K, 1, 2 * C2), 0.05),
    )

    x = jax.random.normal(ks[13], (B, C, T), jnp.float32)
    cond = jax.random.normal(ks[14], (B, Ncond, T), jnp.float32)

    z, logdet = flownet_forward(x, cond, params, tbt=128)
    z = jax.block_until_ready(z)
    logdet = jax.block_until_ready(logdet)

    z_ref, ld_ref = reference_forward(x, cond, params)
    assert jnp.allclose(z, z_ref, atol=1e-3, rtol=1e-3), "z mismatch vs reference"
    assert jnp.allclose(logdet, ld_ref, atol=1e-3, rtol=1e-3), "logdet mismatch vs reference"

    # TODO(synk): reverse (sampling) path, GaussianDiag/StudentT logp head, and
    # LSTM/GRU coupling nets are out of scope of this forward-flow kernel.
    print("KERNEL_OK")
</pallas_src>

<mosaic_0001>
module attributes {stable_mosaic.version = 11 : i64} {
  func.func @_flownet_kernel(%arg0: i32, %arg1: i32, %arg2: memref<9x128xf32, #tpu.memory_space<vmem>>, %arg3: memref<45x128xf32, #tpu.memory_space<vmem>>, %arg4: memref<1x4x9xf32, #tpu.memory_space<vmem>>, %arg5: memref<1x5x9xf32, #tpu.memory_space<vmem>>, %arg6: memref<1x4x1xf32, #tpu.memory_space<vmem>>, %arg7: memref<1x5x1xf32, #tpu.memory_space<vmem>>, %arg8: memref<1x64x4xf32, #tpu.memory_space<vmem>>, %arg9: memref<1x64x45xf32, #tpu.memory_space<vmem>>, %arg10: memref<1x64x1xf32, #tpu.memory_space<vmem>>, %arg11: memref<1x64x1xf32, #tpu.memory_space<vmem>>, %arg12: memref<1x64x1xf32, #tpu.memory_space<vmem>>, %arg13: memref<1x64x64xf32, #tpu.memory_space<vmem>>, %arg14: memref<1x64x1xf32, #tpu.memory_space<vmem>>, %arg15: memref<1x64x1xf32, #tpu.memory_space<vmem>>, %arg16: memref<1x64x1xf32, #tpu.memory_space<vmem>>, %arg17: memref<1x5x64xf32, #tpu.memory_space<vmem>>, %arg18: memref<1x5x1xf32, #tpu.memory_space<vmem>>, %arg19: memref<1x5x64xf32, #tpu.memory_space<vmem>>, %arg20: memref<1x5x1xf32, #tpu.memory_space<vmem>>, %arg21: memref<9x128xf32, #tpu.memory_space<vmem>>, %arg22: memref<1x128xf32, #tpu.memory_space<vmem>>) attributes {dimension_semantics = [#tpu.dimension_semantics<parallel>, #tpu.dimension_semantics<arbitrary>], iteration_bounds = array<i64: 2, 4>, scalar_prefetch = 0 : i64, scratch_operands = 0 : i64, tpu.core_type = #tpu.core_type<tc>, window_params = [{transform_indices = @transform_0, window_bounds = array<i64: 9, 128>}, {transform_indices = @transform_1, window_bounds = array<i64: 45, 128>}, {transform_indices = @transform_2, window_bounds = array<i64: 1, 4, 9>}, {transform_indices = @transform_3, window_bounds = array<i64: 1, 5, 9>}, {transform_indices = @transform_4, window_bounds = array<i64: 1, 4, 1>}, {transform_indices = @transform_5, window_bounds = array<i64: 1, 5, 1>}, {transform_indices = @transform_6, window_bounds = array<i64: 1, 64, 4>}, {transform_indices = @transform_7, window_bounds = array<i64: 1, 64, 45>}, {transform_indices = @transform_8, window_bounds = array<i64: 1, 64, 1>}, {transform_indices = @transform_9, window_bounds = array<i64: 1, 64, 1>}, {transform_indices = @transform_10, window_bounds = array<i64: 1, 64, 1>}, {transform_indices = @transform_11, window_bounds = array<i64: 1, 64, 64>}, {transform_indices = @transform_12, window_bounds = array<i64: 1, 64, 1>}, {transform_indices = @transform_13, window_bounds = array<i64: 1, 64, 1>}, {transform_indices = @transform_14, window_bounds = array<i64: 1, 64, 1>}, {transform_indices = @transform_15, window_bounds = array<i64: 1, 5, 64>}, {transform_indices = @transform_16, window_bounds = array<i64: 1, 5, 1>}, {transform_indices = @transform_17, window_bounds = array<i64: 1, 5, 64>}, {transform_indices = @transform_18, window_bounds = array<i64: 1, 5, 1>}, {transform_indices = @transform_19, window_bounds = array<i64: 9, 128>}, {transform_indices = @transform_20, window_bounds = array<i64: 1, 128>}]} {
    %c0_i32 = arith.constant 0 : i32
    %0 = arith.cmpi eq, %arg1, %c0_i32 : i32
    %1 = arith.extui %0 : i1 to i32
    %c0_i32_0 = arith.constant 0 : i32
    %2 = arith.cmpi ne, %1, %c0_i32_0 : i32
    scf.if %2 {
      %c0_83 = arith.constant 0 : index
      %c0_84 = arith.constant 0 : index
      %124 = vector.load %arg2[%c0_83, %c0_84] : memref<9x128xf32, #tpu.memory_space<vmem>>, vector<9x128xf32>
      %c0_85 = arith.constant 0 : index
      %c0_86 = arith.constant 0 : index
      %125 = vector.load %arg21[%c0_85, %c0_86] : memref<9x128xf32, #tpu.memory_space<vmem>>, vector<9x128xf32>
      tpu.vector_store %arg21[%c0_85, %c0_86], %124 {strides = array<i32>} : memref<9x128xf32, #tpu.memory_space<vmem>>, vector<9x128xf32>,
      %cst_87 = arith.constant 0.000000e+00 : f32
      %126 = vector.broadcast %cst_87 : f32 to vector<1x128xf32>
      %c0_88 = arith.constant 0 : index
      %c0_89 = arith.constant 0 : index
      %127 = vector.load %arg22[%c0_88, %c0_89] : memref<1x128xf32, #tpu.memory_space<vmem>>, vector<1x128xf32>
      tpu.vector_store %arg22[%c0_88, %c0_89], %126 {strides = array<i32>} : memref<1x128xf32, #tpu.memory_space<vmem>>, vector<1x128xf32>,
    } else {
    }
    %c0 = arith.constant 0 : index
    %c0_1 = arith.constant 0 : index
    %3 = vector.load %arg21[%c0, %c0_1] : memref<9x128xf32, #tpu.memory_space<vmem>>, vector<9x128xf32>
    %c0_2 = arith.constant 0 : index
    %c0_3 = arith.constant 0 : index
    %4 = vector.load %arg3[%c0_2, %c0_3] : memref<45x128xf32, #tpu.memory_space<vmem>>, vector<45x128xf32>
    %c0_4 = arith.constant 0 : index
    %c0_5 = arith.constant 0 : index
    %c0_6 = arith.constant 0 : index
    %5 = vector.load %arg4[%c0_4, %c0_5, %c0_6] : memref<1x4x9xf32, #tpu.memory_space<vmem>>, vector<1x4x9xf32>
    %6 = vector.shape_cast %5 : vector<1x4x9xf32> to vector<4x9xf32>
    %cst = arith.constant dense<0.000000e+00> : vector<4x128xf32>
    %7 = tpu.matmul %6, %3, %cst {dimension_numbers = #tpu.dot_dimension_numbers<[1], [0], [0], [1], [0, 0, 1, 1], [], []>} : vector<4x9xf32>, vector<9x128xf32>, vector<4x128xf32> -> vector<4x128xf32>
    %c0_7 = arith.constant 0 : index
    %c0_8 = arith.constant 0 : index
    %c0_9 = arith.constant 0 : index
    %8 = vector.load %arg6[%c0_7, %c0_8, %c0_9] : memref<1x4x1xf32, #tpu.memory_space<vmem>>, vector<1x4x1xf32>
    %9 = vector.shape_cast %8 : vector<1x4x1xf32> to vector<4x1xf32>
    %10 = vector.broadcast %9 : vector<4x1xf32> to vector<4x128xf32>
    %11 = arith.addf %7, %10 : vector<4x128xf32>
    %c0_10 = arith.constant 0 : index
    %c0_11 = arith.constant 0 : index
    %c0_12 = arith.constant 0 : index
    %12 = vector.load %arg5[%c0_10, %c0_11, %c0_12] : memref<1x5x9xf32, #tpu.memory_space<vmem>>, vector<1x5x9xf32>
    %13 = vector.shape_cast %12 : vector<1x5x9xf32> to vector<5x9xf32>
    %cst_13 = arith.constant dense<0.000000e+00> : vector<5x128xf32>
    %14 = tpu.matmul %13, %3, %cst_13 {dimension_numbers = #tpu.dot_dimension_numbers<[1], [0], [0], [1], [0, 0, 1, 1], [], []>} : vector<5x9xf32>, vector<9x128xf32>, vector<5x128xf32> -> vector<5x128xf32>
    %c0_14 = arith.constant 0 : index
    %c0_15 = arith.constant 0 : index
    %c0_16 = arith.constant 0 : index
    %15 = vector.load %arg7[%c0_14, %c0_15, %c0_16] : memref<1x5x1xf32, #tpu.memory_space<vmem>>, vector<1x5x1xf32>
    %16 = vector.shape_cast %15 : vector<1x5x1xf32> to vector<5x1xf32>
    %17 = vector.broadcast %16 : vector<5x1xf32> to vector<5x128xf32>
    %18 = arith.addf %14, %17 : vector<5x128xf32>
    %c0_17 = arith.constant 0 : index
    %c0_18 = arith.constant 0 : index
    %c0_19 = arith.constant 0 : index
    %19 = vector.load %arg8[%c0_17, %c0_18, %c0_19] : memref<1x64x4xf32, #tpu.memory_space<vmem>>, vector<1x64x4xf32>
    %20 = vector.shape_cast %19 : vector<1x64x4xf32> to vector<64x4xf32>
    %cst_20 = arith.constant dense<0.000000e+00> : vector<64x128xf32>
    %21 = tpu.matmul %20, %11, %cst_20 {dimension_numbers = #tpu.dot_dimension_numbers<[1], [0], [0], [1], [0, 0, 1, 1], [], []>} : vector<64x4xf32>, vector<4x128xf32>, vector<64x128xf32> -> vector<64x128xf32>
    %c0_21 = arith.constant 0 : index
    %c0_22 = arith.constant 0 : index
    %c0_23 = arith.constant 0 : index
    %22 = vector.load %arg9[%c0_21, %c0_22, %c0_23] : memref<1x64x45xf32, #tpu.memory_space<vmem>>, vector<1x64x45xf32>
    %23 = vector.shape_cast %22 : vector<1x64x45xf32> to vector<64x45xf32>
    %cst_24 = arith.constant dense<0.000000e+00> : vector<64x128xf32>
    %24 = tpu.matmul %23, %4, %cst_24 {dimension_numbers = #tpu.dot_dimension_numbers<[1], [0], [0], [1], [0, 0, 1, 1], [], []>} : vector<64x45xf32>, vector<45x128xf32>, vector<64x128xf32> -> vector<64x128xf32>
    %25 = arith.addf %21, %24 : vector<64x128xf32>
    %c0_25 = arith.constant 0 : index
    %c0_26 = arith.constant 0 : index
    %c0_27 = arith.constant 0 : index
    %26 = vector.load %arg10[%c0_25, %c0_26, %c0_27] : memref<1x64x1xf32, #tpu.memory_space<vmem>>, vector<1x64x1xf32>
    %27 = vector.shape_cast %26 : vector<1x64x1xf32> to vector<64x1xf32>
    %28 = vector.broadcast %27 : vector<64x1xf32> to vector<64x128xf32>
    %29 = arith.addf %25, %28 : vector<64x128xf32>
    %c0_28 = arith.constant 0 : index
    %c0_29 = arith.constant 0 : index
    %c0_30 = arith.constant 0 : index
    %30 = vector.load %arg11[%c0_28, %c0_29, %c0_30] : memref<1x64x1xf32, #tpu.memory_space<vmem>>, vector<1x64x1xf32>
    %31 = vector.shape_cast %30 : vector<1x64x1xf32> to vector<64x1xf32>
    %c0_31 = arith.constant 0 : index
    %c0_32 = arith.constant 0 : index
    %c0_33 = arith.constant 0 : index
    %32 = vector.load %arg12[%c0_31, %c0_32, %c0_33] : memref<1x64x1xf32, #tpu.memory_space<vmem>>, vector<1x64x1xf32>
    %33 = vector.shape_cast %32 : vector<1x64x1xf32> to vector<64x1xf32>
    %cst_34 = arith.constant dense<0.000000e+00> : vector<128xf32>
    %34 = vector.multi_reduction <add>, %29, %cst_34 [0] : vector<64x128xf32> to vector<128xf32>
    %35 = vector.shape_cast %34 : vector<128xf32> to vector<1x128xf32>
    %cst_35 = arith.constant 6.400000e+01 : f32
    %36 = vector.broadcast %cst_35 : f32 to vector<1x128xf32>
    %37 = arith.divf %35, %36 : vector<1x128xf32>
    %38 = vector.broadcast %37 : vector<1x128xf32> to vector<64x128xf32>
    %39 = arith.subf %29, %38 : vector<64x128xf32>
    %40 = arith.mulf %39, %39 : vector<64x128xf32>
    %cst_36 = arith.constant dense<0.000000e+00> : vector<128xf32>
    %41 = vector.multi_reduction <add>, %40, %cst_36 [0] : vector<64x128xf32> to vector<128xf32>
    %42 = vector.shape_cast %41 : vector<128xf32> to vector<1x128xf32>
    %cst_37 = arith.constant 6.400000e+01 : f32
    %43 = vector.broadcast %cst_37 : f32 to vector<1x128xf32>
    %44 = arith.divf %42, %43 : vector<1x128xf32>
    %45 = vector.broadcast %37 : vector<1x128xf32> to vector<64x128xf32>
    %46 = arith.subf %29, %45 : vector<64x128xf32>
    %cst_38 = arith.constant 9.99999974E-6 : f32
    %47 = vector.broadcast %cst_38 : f32 to vector<1x128xf32>
    %48 = arith.addf %44, %47 : vector<1x128xf32>
    %49 = math.rsqrt %48 : vector<1x128xf32>
    %50 = vector.broadcast %49 : vector<1x128xf32> to vector<64x128xf32>
    %51 = arith.mulf %46, %50 : vector<64x128xf32>
    %52 = vector.broadcast %31 : vector<64x1xf32> to vector<64x128xf32>
    %53 = arith.mulf %51, %52 : vector<64x128xf32>
    %54 = vector.broadcast %33 : vector<64x1xf32> to vector<64x128xf32>
    %55 = arith.addf %53, %54 : vector<64x128xf32>
    %cst_39 = arith.constant 0.000000e+00 : f32
    %56 = vector.broadcast %cst_39 : f32 to vector<64x128xf32>
    %57 = arith.maximumf %55, %56 : vector<64x128xf32>
    %c0_40 = arith.constant 0 : index
    %c0_41 = arith.constant 0 : index
    %c0_42 = arith.constant 0 : index
    %58 = vector.load %arg13[%c0_40, %c0_41, %c0_42] : memref<1x64x64xf32, #tpu.memory_space<vmem>>, vector<1x64x64xf32>
    %59 = vector.shape_cast %58 : vector<1x64x64xf32> to vector<64x64xf32>
    %cst_43 = arith.constant dense<0.000000e+00> : vector<64x128xf32>
    %60 = tpu.matmul %59, %57, %cst_43 {dimension_numbers = #tpu.dot_dimension_numbers<[1], [0], [0], [1], [0, 0, 1, 1], [], []>} : vector<64x64xf32>, vector<64x128xf32>, vector<64x128xf32> -> vector<64x128xf32>
    %c0_44 = arith.constant 0 : index
    %c0_45 = arith.constant 0 : index
    %c0_46 = arith.constant 0 : index
    %61 = vector.load %arg14[%c0_44, %c0_45, %c0_46] : memref<1x64x1xf32, #tpu.memory_space<vmem>>, vector<1x64x1xf32>
    %62 = vector.shape_cast %61 : vector<1x64x1xf32> to vector<64x1xf32>
    %63 = vector.broadcast %62 : vector<64x1xf32> to vector<64x128xf32>
    %64 = arith.addf %60, %63 : vector<64x128xf32>
    %c0_47 = arith.constant 0 : index
    %c0_48 = arith.constant 0 : index
    %c0_49 = arith.constant 0 : index
    %65 = vector.load %arg15[%c0_47, %c0_48, %c0_49] : memref<1x64x1xf32, #tpu.memory_space<vmem>>, vector<1x64x1xf32>
    %66 = vector.shape_cast %65 : vector<1x64x1xf32> to vector<64x1xf32>
    %c0_50 = arith.constant 0 : index
    %c0_51 = arith.constant 0 : index
    %c0_52 = arith.constant 0 : index
    %67 = vector.load %arg16[%c0_50, %c0_51, %c0_52] : memref<1x64x1xf32, #tpu.memory_space<vmem>>, vector<1x64x1xf32>
    %68 = vector.shape_cast %67 : vector<1x64x1xf32> to vector<64x1xf32>
    %cst_53 = arith.constant dense<0.000000e+00> : vector<128xf32>
    %69 = vector.multi_reduction <add>, %64, %cst_53 [0] : vector<64x128xf32> to vector<128xf32>
    %70 = vector.shape_cast %69 : vector<128xf32> to vector<1x128xf32>
    %cst_54 = arith.constant 6.400000e+01 : f32
    %71 = vector.broadcast %cst_54 : f32 to vector<1x128xf32>
    %72 = arith.divf %70, %71 : vector<1x128xf32>
    %73 = vector.broadcast %72 : vector<1x128xf32> to vector<64x128xf32>
    %74 = arith.subf %64, %73 : vector<64x128xf32>
    %75 = arith.mulf %74, %74 : vector<64x128xf32>
    %cst_55 = arith.constant dense<0.000000e+00> : vector<128xf32>
    %76 = vector.multi_reduction <add>, %75, %cst_55 [0] : vector<64x128xf32> to vector<128xf32>
    %77 = vector.shape_cast %76 : vector<128xf32> to vector<1x128xf32>
    %cst_56 = arith.constant 6.400000e+01 : f32
    %78 = vector.broadcast %cst_56 : f32 to vector<1x128xf32>
    %79 = arith.divf %77, %78 : vector<1x128xf32>
    %80 = vector.broadcast %72 : vector<1x128xf32> to vector<64x128xf32>
    %81 = arith.subf %64, %80 : vector<64x128xf32>
    %cst_57 = arith.constant 9.99999974E-6 : f32
    %82 = vector.broadcast %cst_57 : f32 to vector<1x128xf32>
    %83 = arith.addf %79, %82 : vector<1x128xf32>
    %84 = math.rsqrt %83 : vector<1x128xf32>
    %85 = vector.broadcast %84 : vector<1x128xf32> to vector<64x128xf32>
    %86 = arith.mulf %81, %85 : vector<64x128xf32>
    %87 = vector.broadcast %66 : vector<64x1xf32> to vector<64x128xf32>
    %88 = arith.mulf %86, %87 : vector<64x128xf32>
    %89 = vector.broadcast %68 : vector<64x1xf32> to vector<64x128xf32>
    %90 = arith.addf %88, %89 : vector<64x128xf32>
    %cst_58 = arith.constant 0.000000e+00 : f32
    %91 = vector.broadcast %cst_58 : f32 to vector<64x128xf32>
    %92 = arith.maximumf %90, %91 : vector<64x128xf32>
    %c0_59 = arith.constant 0 : index
    %c0_60 = arith.constant 0 : index
    %c0_61 = arith.constant 0 : index
    %93 = vector.load %arg17[%c0_59, %c0_60, %c0_61] : memref<1x5x64xf32, #tpu.memory_space<vmem>>, vector<1x5x64xf32>
    %94 = vector.shape_cast %93 : vector<1x5x64xf32> to vector<5x64xf32>
    %cst_62 = arith.constant dense<0.000000e+00> : vector<5x128xf32>
    %95 = tpu.matmul %94, %92, %cst_62 {dimension_numbers = #tpu.dot_dimension_numbers<[1], [0], [0], [1], [0, 0, 1, 1], [], []>} : vector<5x64xf32>, vector<64x128xf32>, vector<5x128xf32> -> vector<5x128xf32>
    %c0_63 = arith.constant 0 : index
    %c0_64 = arith.constant 0 : index
    %c0_65 = arith.constant 0 : index
    %96 = vector.load %arg18[%c0_63, %c0_64, %c0_65] : memref<1x5x1xf32, #tpu.memory_space<vmem>>, vector<1x5x1xf32>
    %97 = vector.shape_cast %96 : vector<1x5x1xf32> to vector<5x1xf32>
    %98 = vector.broadcast %97 : vector<5x1xf32> to vector<5x128xf32>
    %99 = arith.addf %95, %98 : vector<5x128xf32>
    %c0_66 = arith.constant 0 : index
    %c0_67 = arith.constant 0 : index
    %c0_68 = arith.constant 0 : index
    %100 = vector.load %arg19[%c0_66, %c0_67, %c0_68] : memref<1x5x64xf32, #tpu.memory_space<vmem>>, vector<1x5x64xf32>
    %101 = vector.shape_cast %100 : vector<1x5x64xf32> to vector<5x64xf32>
    %cst_69 = arith.constant dense<0.000000e+00> : vector<5x128xf32>
    %102 = tpu.matmul %101, %92, %cst_69 {dimension_numbers = #tpu.dot_dimension_numbers<[1], [0], [0], [1], [0, 0, 1, 1], [], []>} : vector<5x64xf32>, vector<64x128xf32>, vector<5x128xf32> -> vector<5x128xf32>
    %c0_70 = arith.constant 0 : index
    %c0_71 = arith.constant 0 : index
    %c0_72 = arith.constant 0 : index
    %103 = vector.load %arg20[%c0_70, %c0_71, %c0_72] : memref<1x5x1xf32, #tpu.memory_space<vmem>>, vector<1x5x1xf32>
    %104 = vector.shape_cast %103 : vector<1x5x1xf32> to vector<5x1xf32>
    %105 = vector.broadcast %104 : vector<5x1xf32> to vector<5x128xf32>
    %106 = arith.addf %102, %105 : vector<5x128xf32>
    %107 = arith.negf %106 : vector<5x128xf32>
    %108 = math.exp %107 : vector<5x128xf32>
    %cst_73 = arith.constant 1.000000e+00 : f32
    %109 = vector.broadcast %cst_73 : f32 to vector<5x128xf32>
    %110 = arith.addf %109, %108 : vector<5x128xf32>
    %111 = arith.divf %109, %110 : vector<5x128xf32>
    %cst_74 = arith.constant 9.99999997E-7 : f32
    %112 = vector.broadcast %cst_74 : f32 to vector<5x128xf32>
    %113 = arith.addf %111, %112 : vector<5x128xf32>
    %114 = arith.addf %18, %99 : vector<5x128xf32>
    %115 = arith.mulf %114, %113 : vector<5x128xf32>
    %c0_75 = arith.constant 0 : index
    %c0_76 = arith.constant 0 : index
    %116 = vector.load %arg21[%c0_75, %c0_76] : memref<9x128xf32, #tpu.memory_space<vmem>>, vector<4x128xf32>
    tpu.vector_store %arg21[%c0_75, %c0_76], %11 {strides = array<i32>} : memref<9x128xf32, #tpu.memory_space<vmem>>, vector<4x128xf32>,
    %c4 = arith.constant 4 : index
    %c0_77 = arith.constant 0 : index
    %117 = vector.load %arg21[%c4, %c0_77] : memref<9x128xf32, #tpu.memory_space<vmem>>, vector<5x128xf32>
    tpu.vector_store %arg21[%c4, %c0_77], %115 {strides = array<i32>} : memref<9x128xf32, #tpu.memory_space<vmem>>, vector<5x128xf32>,
    %c0_78 = arith.constant 0 : index
    %c0_79 = arith.constant 0 : index
    %118 = vector.load %arg22[%c0_78, %c0_79] : memref<1x128xf32, #tpu.memory_space<vmem>>, vector<1x128xf32>
    %119 = math.log %113 : vector<5x128xf32>
    %cst_80 = arith.constant dense<0.000000e+00> : vector<128xf32>
    %120 = vector.multi_reduction <add>, %119, %cst_80 [0] : vector<5x128xf32> to vector<128xf32>
    %121 = vector.shape_cast %120 : vector<128xf32> to vector<1x128xf32>
    %122 = arith.addf %118, %121 : vector<1x128xf32>
    %c0_81 = arith.constant 0 : index
    %c0_82 = arith.constant 0 : index
    %123 = vector.load %arg22[%c0_81, %c0_82] : memref<1x128xf32, #tpu.memory_space<vmem>>, vector<1x128xf32>
    tpu.vector_store %arg22[%c0_81, %c0_82], %122 {strides = array<i32>} : memref<1x128xf32, #tpu.memory_space<vmem>>, vector<1x128xf32>,
    return
  }
  func.func @transform_0(%arg0: i32, %arg1: i32) -> (i32, i32) {
    %c0_i32 = arith.constant 0 : i32
    %c0_i32_0 = arith.constant 0 : i32
    return %c0_i32, %arg0 : i32, i32
  }
  func.func @transform_1(%arg0: i32, %arg1: i32) -> (i32, i32) {
    %c0_i32 = arith.constant 0 : i32
    %c0_i32_0 = arith.constant 0 : i32
    return %c0_i32, %arg0 : i32, i32
  }
  func.func @transform_2(%arg0: i32, %arg1: i32) -> (i32, i32, i32) {
    %c0_i32 = arith.constant 0 : i32
    %c0_i32_0 = arith.constant 0 : i32
    %c0_i32_1 = arith.constant 0 : i32
    return %arg1, %c0_i32, %c0_i32_0 : i32, i32, i32
  }
  func.func @transform_3(%arg0: i32, %arg1: i32) -> (i32, i32, i32) {
    %c0_i32 = arith.constant 0 : i32
    %c0_i32_0 = arith.constant 0 : i32
    %c0_i32_1 = arith.constant 0 : i32
    return %arg1, %c0_i32, %c0_i32_0 : i32, i32, i32
  }
  func.func @transform_4(%arg0: i32, %arg1: i32) -> (i32, i32, i32) {
    %c0_i32 = arith.constant 0 : i32
    %c0_i32_0 = arith.constant 0 : i32
    %c0_i32_1 = arith.constant 0 : i32
    return %arg1, %c0_i32, %c0_i32_0 : i32, i32, i32
  }
  func.func @transform_5(%arg0: i32, %arg1: i32) -> (i32, i32, i32) {
    %c0_i32 = arith.constant 0 : i32
    %c0_i32_0 = arith.constant 0 : i32
    %c0_i32_1 = arith.constant 0 : i32
    return %arg1, %c0_i32, %c0_i32_0 : i32, i32, i32
  }
  func.func @transform_6(%arg0: i32, %arg1: i32) -> (i32, i32, i32) {
    %c0_i32 = arith.constant 0 : i32
    %c0_i32_0 = arith.constant 0 : i32
    %c0_i32_1 = arith.constant 0 : i32
    return %arg1, %c0_i32, %c0_i32_0 : i32, i32, i32
  }
  func.func @transform_7(%arg0: i32, %arg1: i32) -> (i32, i32, i32) {
    %c0_i32 = arith.constant 0 : i32
    %c0_i32_0 = arith.constant 0 : i32
    %c0_i32_1 = arith.constant 0 : i32
    return %arg1, %c0_i32, %c0_i32_0 : i32, i32, i32
  }
  func.func @transform_8(%arg0: i32, %arg1: i32) -> (i32, i32, i32) {
    %c0_i32 = arith.constant 0 : i32
    %c0_i32_0 = arith.constant 0 : i32
    %c0_i32_1 = arith.constant 0 : i32
    return %arg1, %c0_i32, %c0_i32_0 : i32, i32, i32
  }
  func.func @transform_9(%arg0: i32, %arg1: i32) -> (i32, i32, i32) {
    %c0_i32 = arith.constant 0 : i32
    %c0_i32_0 = arith.constant 0 : i32
    %c0_i32_1 = arith.constant 0 : i32
    return %arg1, %c0_i32, %c0_i32_0 : i32, i32, i32
  }
  func.func @transform_10(%arg0: i32, %arg1: i32) -> (i32, i32, i32) {
    %c0_i32 = arith.constant 0 : i32
    %c0_i32_0 = arith.constant 0 : i32
    %c0_i32_1 = arith.constant 0 : i32
    return %arg1, %c0_i32, %c0_i32_0 : i32, i32, i32
  }
  func.func @transform_11(%arg0: i32, %arg1: i32) -> (i32, i32, i32) {
    %c0_i32 = arith.constant 0 : i32
    %c0_i32_0 = arith.constant 0 : i32
    %c0_i32_1 = arith.constant 0 : i32
    return %arg1, %c0_i32, %c0_i32_0 : i32, i32, i32
  }
  func.func @transform_12(%arg0: i32, %arg1: i32) -> (i32, i32, i32) {
    %c0_i32 = arith.constant 0 : i32
    %c0_i32_0 = arith.constant 0 : i32
    %c0_i32_1 = arith.constant 0 : i32
    return %arg1, %c0_i32, %c0_i32_0 : i32, i32, i32
  }
  func.func @transform_13(%arg0: i32, %arg1: i32) -> (i32, i32, i32) {
    %c0_i32 = arith.constant 0 : i32
    %c0_i32_0 = arith.constant 0 : i32
    %c0_i32_1 = arith.constant 0 : i32
    return %arg1, %c0_i32, %c0_i32_0 : i32, i32, i32
  }
  func.func @transform_14(%arg0: i32, %arg1: i32) -> (i32, i32, i32) {
    %c0_i32 = arith.constant 0 : i32
    %c0_i32_0 = arith.constant 0 : i32
    %c0_i32_1 = arith.constant 0 : i32
    return %arg1, %c0_i32, %c0_i32_0 : i32, i32, i32
  }
  func.func @transform_15(%arg0: i32, %arg1: i32) -> (i32, i32, i32) {
    %c0_i32 = arith.constant 0 : i32
    %c0_i32_0 = arith.constant 0 : i32
    %c0_i32_1 = arith.constant 0 : i32
    return %arg1, %c0_i32, %c0_i32_0 : i32, i32, i32
  }
  func.func @transform_16(%arg0: i32, %arg1: i32) -> (i32, i32, i32) {
    %c0_i32 = arith.constant 0 : i32
    %c0_i32_0 = arith.constant 0 : i32
    %c0_i32_1 = arith.constant 0 : i32
    return %arg1, %c0_i32, %c0_i32_0 : i32, i32, i32
  }
  func.func @transform_17(%arg0: i32, %arg1: i32) -> (i32, i32, i32) {
    %c0_i32 = arith.constant 0 : i32
    %c0_i32_0 = arith.constant 0 : i32
    %c0_i32_1 = arith.constant 0 : i32
    return %arg1, %c0_i32, %c0_i32_0 : i32, i32, i32
  }
  func.func @transform_18(%arg0: i32, %arg1: i32) -> (i32, i32, i32) {
    %c0_i32 = arith.constant 0 : i32
    %c0_i32_0 = arith.constant 0 : i32
    %c0_i32_1 = arith.constant 0 : i32
    return %arg1, %c0_i32, %c0_i32_0 : i32, i32, i32
  }
  func.func @transform_19(%arg0: i32, %arg1: i32) -> (i32, i32) {
    %c0_i32 = arith.constant 0 : i32
    %c0_i32_0 = arith.constant 0 : i32
    return %c0_i32, %arg0 : i32, i32
  }
  func.func @transform_20(%arg0: i32, %arg1: i32) -> (i32, i32) {
    %c0_i32 = arith.constant 0 : i32
    %c0_i32_0 = arith.constant 0 : i32
    return %c0_i32, %arg0 : i32, i32
  }
}

</mosaic_0001>

<bundles_post_ra>
// kernel: tpu_custom_call.1
= control target key start
LH: loop header
LB: loop body
LE: loop exit
PB: predicated region body
PF: predicated region fallthrough
CT: control target
= control target key end

     0   :  { %s3223_s0 = inlined_call_operand.hbm [shape: f32[9,256], index: 0, kind: input, shape index: {}, may-alias: {0,19}]   ;;  %s3224_s1 = inlined_call_operand.vmem [shape: f32[45,256], index: 1, kind: input, shape index: {}]   ;;  %s3225_s2 = inlined_call_operand.vmem [shape: f32[4,4,9], index: 2, kind: input, shape index: {}]   ;;  %s3226_s3 = inlined_call_operand.vmem [shape: f32[4,5,9], index: 3, kind: input, shape index: {}]   ;;  %s3227_s4 = inlined_call_operand.vmem [shape: f32[4,4,1], index: 4, kind: input, shape index: {}]   ;;  %s3228_s5 = inlined_call_operand.vmem [shape: f32[4,5,1], index: 5, kind: input, shape index: {}]   ;;  %s3229_s6 = inlined_call_operand.vmem [shape: f32[4,64,4], index: 6, kind: input, shape index: {}]   ;;  %s3230_s7 = inlined_call_operand.vmem [shape: f32[4,64,45], index: 7, kind: input, shape index: {}]   ;;  %s3231_s8 = inlined_call_operand.vmem [shape: f32[4,64,1], index: 8, kind: input, shape index: {}]   ;;  %s3232_s9 = inlined_call_operand.vmem [shape: f32[4,64,1], index: 9, kind: input, shape index: {}]   ;;  %s3233_s10 = inlined_call_operand.vmem [shape: f32[4,64,1], index: 10, kind: input, shape index: {}]   ;;  %s3234_s11 = inlined_call_operand.vmem [shape: f32[4,64,64], index: 11, kind: input, shape index: {}]   ;;  %s3235_s12 = inlined_call_operand.vmem [shape: f32[4,64,1], index: 12, kind: input, shape index: {}]   ;;  %s3236_s13 = inlined_call_operand.vmem [shape: f32[4,64,1], index: 13, kind: input, shape index: {}]   ;;  %s3237_s14 = inlined_call_operand.vmem [shape: f32[4,64,1], index: 14, kind: input, shape index: {}]   ;;  %s3238_s15 = inlined_call_operand.vmem [shape: f32[4,5,64], index: 15, kind: input, shape index: {}]   ;;  %s3239_s16 = inlined_call_operand.vmem [shape: f32[4,5,1], index: 16, kind: input, shape index: {}]   ;;  %s3240_s17 = inlined_call_operand.vmem [shape: f32[4,5,64], index: 17, kind: input, shape index: {}]   ;;  %s3241_s18 = inlined_call_operand.vmem [shape: f32[4,5,1], index: 18, kind: input, shape index: {}]   ;;  %s3242_s19 = inlined_call_operand.hbm [shape: f32[9,256], index: 19, kind: output, shape index: {0}, may-alias: {0,19}]   ;;  %s3243_s20 = inlined_call_operand.hbm [shape: f32[1,256], index: 20, kind: output, shape index: {1}]  }
   0x1   :  { %3262 = sst [smem:[#allocation29_spill]] %s3223_s0 }
   0x2   :  { %3263 = sst [smem:[#allocation30_spill]] %s3224_s1 }
   0x3   :  { %3264 = sst [smem:[#allocation31_spill]] %s3225_s2 }
   0x4   :  { %3265 = sst [smem:[#allocation32_spill]] %s3226_s3 }
   0x5   :  { %3266 = sst [smem:[#allocation33_spill]] %s3227_s4 }
   0x6   :  { %3267 = sst [smem:[#allocation34_spill]] %s3228_s5 }
   0x7   :  { %3268 = sst [smem:[#allocation35_spill]] %s3229_s6 }
   0x8   :  { %3269 = sst [smem:[#allocation36_spill]] %s3230_s7 }
   0x9   :  { %3270 = sst [smem:[#allocation37_spill]] %s3231_s8 }
   0xa   :  { %3271 = sst [smem:[#allocation38_spill]] %s3232_s9 }
   0xb   :  { %3272 = sst [smem:[#allocation39_spill]] %s3233_s10 }
   0xc   :  { %3273 = sst [smem:[#allocation40_spill]] %s3234_s11 }
   0xd   :  { %3274 = sst [smem:[#allocation41_spill]] %s3235_s12 }
   0xe   :  { %3275 = sst [smem:[#allocation42_spill]] %s3236_s13 }
   0xf   :  { %3276 = sst [smem:[#allocation43_spill]] %s3237_s14 }
  0x10   :  { %3277 = sst [smem:[#allocation44_spill]] %s3238_s15 }
  0x11   :  { %3278 = sst [smem:[#allocation45_spill]] %s3239_s16 }
  0x12   :  { %3279 = sst [smem:[#allocation46_spill]] %s3240_s17 }
  0x13   :  { %3280 = sst [smem:[#allocation47_spill]] %s3241_s18 }
  0x14   :  { %3281 = sst [smem:[#allocation48_spill]] %s3242_s19 }
  0x15   :  { %3282 = sst [smem:[#allocation49_spill]] %s3243_s20 }
  0x16   :  { %26 = vsyncpa [#allocation3], 0 }
  0x17   :  { %28 = vsyncpa [#allocation3 + $0x1], 0 }
  0x18   :  { %29 = vsyncpa [#allocation4], 0 }
  0x19   :  { %31 = vsyncpa [#allocation4 + $0x1], 0 }
  0x1a   :  { %32 = vsyncpa [#allocation8], 0 }
  0x1b   :  { %34 = vsyncpa [#allocation8 + $0x1], 0  ;;  %s2782_s1 = smov 0   ;;  %s2784_s22 = smov 0  }
  0x1c   :  { %s2786_s23 = smov 0   ;;  %s2788_s24 = smov 0  }
  0x1d   :  { %s2790_s2 = smov 0   ;;  %s2792_s25 = smov 0  }
  0x1e   :  { %s2794_s3 = smov 0   ;;  %s2796_s26 = smov 0  }
  0x1f LB: > { %3283 = sst [smem:[#allocation12_spill]] %s2638_s1  ;;  %s2313_s27 = sadd.s32 4294967295, %s2666_s26   ;;  %s2666_s26 = sphi %s2796_s26, %s40_s26   ;;  %s2662_s3 = sphi %s2794_s3, %s3350_s3   ;;  %s2658_s25 = sphi %s2792_s25, %s3349_s25   ;;  %s2654_s2 = sphi %s2790_s2, %s3348_s2   ;;  %s2650_s24 = sphi %s2788_s24, %s3347_s24   ;;  %s2646_s23 = sphi %s2786_s23, %s3346_s23   ;;  %s2642_s22 = sphi %s2784_s22, %s3345_s22   ;;  %s2638_s1 = sphi %s2782_s1, %s3344_s1  }
  0x20   : > { %3284 = sst [smem:[#allocation13_spill]] %s2642_s22  ;;  %s2314_s28 = sadd.s32 4294967294, %s2666_s26  }
  0x21   : > { %3285 = sst [smem:[#allocation14_spill]] %s2646_s23  ;;  %s49_s4 = sadd.s32 1, %s2658_s25 }
  0x22   : > { %3286 = sst [smem:[#allocation15_spill]] %s2650_s24  ;;  %s52_s29 = sadd.s32 1, %s2662_s3 }
  0x23   : > { %3287 = sst [smem:[#allocation16_spill]] %s2654_s2  ;;  %p50_p0 = scmp.ge.s32.totalorder %s49_s4, 4 }
  0x24   : > { %3288 = sst [smem:[#allocation17_spill]] %s2658_s25  ;;  %s59_s30 = sadd.s32 1, %s2646_s23 }
  0x25   : > { %3289 = sst [smem:[#allocation18_spill]] %s2662_s3  ;;  %p66_p1 = scmp.ne.s32.totalorder %s2646_s23, %s2642_s22 }
  0x26   : > { %3290 = sst [smem:[#allocation19_spill]] %s2666_s26  ;;  %p67_p2 = scmp.eq.s32.totalorder %s2666_s26, 0 }
  0x27   : > { %s3352_s4 = smov (%p50_p0, %s49_s4), 0  ;;  %s3354_s29 = smov (!%p50_p0, %s52_s29), %s2662_s3 }
  0x28   : > { %3291 = sst [smem:[#allocation20_spill]] %s3352_s4  ;;  %p2833_p3 = por %p67_p2, %p66_p1 }
  0x29   : > { %p72_p4 = scmp.ne.s32.totalorder %s2642_s22, %s2638_s1  ;;  %p54_p5 = scmp.ge.s32.totalorder %s3354_s29, 2 }
  0x2a   : > { %p73_p6 = scmp.eq.s32.totalorder %s2313_s27, 0  ;;  %p564_p7 = scmp.eq.s32.totalorder %s2313_s27, 7 }
  0x2b   : > { %p570_p8 = scmp.eq.s32.totalorder %s2314_s28, 7  ;;  %s3356_s29 = smov (%p54_p5, %s3354_s29), 0 }
  0x2c   : > { %3293 = sst [smem:[#allocation21_spill]] %s3356_s29  ;;  %p2841_p9 = por %p73_p6, %p72_p4 }
  0x2d   : > { %p2845_p10 = por %p564_p7, %p66_p1  ;;  %s56_s4 = ssub.s32 %s2662_s3, %s3356_s29 }
  0x2e   : > { %p2851_p11 = por %p570_p8, %p72_p4  ;;  %p57_p12 = scmp.eq.s32.totalorder %s56_s4, 0 }
  0x2f   : > { %s3295_s25 = scalar_select %p2845_p10, 1, 0 }
  0x30   : > { %s3297_s20 = scalar_select %p2851_p11, 1, 0 }
  0x31   : > { %3296 = sst [smem:[#allocation22_spill]] %s3295_s25  ;;  %p2316_p13 = scmp.ge.s32.totalorder %s2666_s26, 8 }
  0x32   : > { %3298 = sst [smem:[#allocation23_spill]] %s3297_s20  ;;  %s616_s27 = sand.u32 (!%p2316_p13), 1, %s2646_s23  }
  0x33   : > { %s2856_s1 = scalar_select %p57_p12, %s2646_s23, %s59_s30  }
  0x34   : > { %612 = sbr.rel (%p2316_p13) target bundleno = 72 (0x48), region = 16  ;;  %s2318_s28 = sshll.u32 (!%p2316_p13), %s2662_s3, 3 }
  0x35   : > { %3299 = sst [smem:[#allocation24_spill]] %s2856_s1  ;;  %s2317_s19 = sshll.u32 (!%p2316_p13), %s616_s27, 4 }
  0x36   : > { %s3300_s25 = sld [smem:[#allocation29_spill]] (!%p2316_p13)  ;;  %s620_s16 = scalar_lea.vmem (!%p2316_p13), [#allocation2], %s2317_s19 }
  0x37   : > { %s627_s14 = sshll.u32 (!%p2316_p13), %s620_s16, 4  ;;  %s617_s4 = scalar_lea.sflag (!%p2316_p13), [#allocation3], %s616_s27  ;;  %s628_s14 = int_to_ptr.vmem [resolvable:$true] %s627_s14 }
  0x38   : > { %s2668_s30 = smov (!%p2316_p13), 256   ;;  %s2669_s1 = smov (!%p2316_p13), 128  }
  0x39   : > { %s2670_s20 = smov 8   ;;  %s2404_s3 = smul.u32 (%p2833_p3), 48, %s616_s27 }
  0x3a   : > { %636 = sbr.rel (!%p2833_p3) target bundleno = 72 (0x48), region = 24  ;;  %s3301_s12 = sld [smem:[#allocation30_spill]] (%p2833_p3) }
  0x3b   : > { %s640_s16 = scalar_lea.vmem (%p2833_p3), [#allocation5], %s2404_s3 }
  0x3c   : > { %s624_s29 = scalar_lea.hbm %s3300_s25, %s2318_s28 }
  0x3d   : > { %s625_s17 = sshll.u32 %s624_s29, 4  ;;  %s626_s17 = int_to_ptr.hbm [resolvable:$true] %s625_s17 }
  0x3e   : > { %2406 = dma.hbm_to_vmem [thread:$0]  (%p2833_p3), %s626_s17, 256, %s628_s14, %s617_s4, %s2668_s30, %s2669_s1, %s2670_s20  }
  0x40   : > { %s642_s18 = scalar_lea.vmem %s3301_s12, %s2318_s28 }
  0x41   : > { %v681_v0 = vld [vmem:[%s642_s18] sm:$0xff]  ;;  %v683_v1 = vld [vmem:[%s642_s18 + $0x10] sm:$0xff] }
  0x42   : > { %v685_v2 = vld [vmem:[%s642_s18 + $0x20] sm:$0xff]  ;;  %682 = vst [vmem:[%s640_s16] sm:$0xff] %v681_v0  ;;  %v687_v3 = vld [vmem:[%s642_s18 + $0x30] sm:$0xff] }
  0x43   : > { %684 = vst [vmem:[%s640_s16 + $0x8] sm:$0xff] %v683_v1  ;;  %v689_v4 = vld [vmem:[%s642_s18 + $0x40] sm:$0xff]  ;;  %v691_v5 = vld [vmem:[%s642_s18 + $0x50] sm:$0xff] }
  0x44   : > { %686 = vst [vmem:[%s640_s16 + $0x10] sm:$0xff] %v685_v2 }
  0x45   : > { %688 = vst [vmem:[%s640_s16 + $0x18] sm:$0xff] %v687_v3 }
  0x46   : > { %690 = vst [vmem:[%s640_s16 + $0x20] sm:$0xff] %v689_v4 }
  0x47   : > { %692 = vst [vmem:[%s640_s16 + $0x28] sm:$0xff] %v691_v5 }
  0x48 PF: > { %p2320_p0 = scmp.ge.s32.totalorder %s2666_s26, 1  ;;  %p825_p1 = scmp.lt.s32.totalorder %s2666_s26, 9 }
  0x4a   : > { %p826_p2 = pnand %p2320_p0, %p825_p1 }
  0x4c   : > { %829 = sbr.rel (%p826_p2) target bundleno = 1009 (0x3f1), region = 130 }
  0x51   : > { %s2874_s12 = sand.u32 1, %s2642_s22  }
  0x52   : > { %s2321_s13 = sshll.u32 %s2874_s12, 4  ;;  %s832_s14 = scalar_lea.sflag [#allocation3], %s2874_s12 }
  0x53   : > { %s2878_s17 = scalar_lea.vmem [#allocation2], %s2321_s13 }
  0x54   : > { %3302 = sst [smem:[#allocation25_spill]] %s2878_s17 }
  0x55   : > { %2625 = dma.done.wait (%p2841_p9), %s832_s14, 256  }
  0x56   : > { %2627 = vsyncadd (%p2841_p9), %s832_s14, 4294967040  ;;  %s2405_s19 = smul.u32 48, %s2874_s12  ;;  %p985_p3 = scmp.lt.s32.totalorder %s2650_s24, 3 }
  0x57   : > { %s3303_s3 = sld [smem:[#allocation31_spill]]  ;;  %s2968_s28 = scalar_lea.vmem [#allocation6], %s2321_s13 }
  0x58   : > { %s986_s20 = scalar_select %p985_p3, %s2650_s24, 3 }
  0x59   : > { %s3306_s18 = sld [smem:[#allocation33_spill]] }
  0x5a   : > { %s2323_s1 = sshll.u32 %s986_s20, 2  ;;  %s2887_s23 = sshll.u32 %s986_s20, 3 }
  0x5b   : > { %s2387_s25 = sshll.u32 %s986_s20, 6  ;;  %s3309_s6 = sld [smem:[#allocation35_spill]] }
  0x5c   : > { %s3311_s7 = sld [smem:[#allocation36_spill]] }
  0x5d   : > { %s2892_s29 = scalar_lea.vmem %s3303_s3, %s2323_s1  ;;  %s3312_s8 = sld [smem:[#allocation37_spill]] }
  0x5e   : > { %3304 = sst [smem:[#allocation26_spill]] %s2892_s29 }
  0x5f   : > { %s996_s16 = scalar_lea.vmem %s3306_s18, %s2323_s1  ;;  %s3313_s9 = sld [smem:[#allocation38_spill]] }
  0x60   : > { %s3314_s10 = sld [smem:[#allocation39_spill]] }
  0x61   : > { %s2912_s0 = scalar_lea.vmem %s3309_s6, %s2387_s25  ;;  %s3315_s11 = sld [smem:[#allocation40_spill]] }
  0x62   : > { %3310 = sst [smem:[#allocation27_spill]] %s2912_s0  ;;  %s2917_s4 = scalar_lea.vmem %s3311_s7, %s2387_s25 }
  0x63   : > { %s2922_s22 = scalar_lea.vmem %s3312_s8, %s2387_s25  ;;  %s3317_s1 = sld [smem:[#allocation41_spill]] }
  0x64   : > { %s3318_s20 = sld [smem:[#allocation42_spill]]  ;;  %s2966_s6 = scalar_lea.vmem [#allocation5], %s2405_s19 }
  0x65   : > { %s2927_s26 = scalar_lea.vmem %s3313_s9, %s2387_s25  ;;  %s3319_s17 = sld [smem:[#allocation43_spill]] }
  0x66   : > { %s2932_s24 = scalar_lea.vmem %s3314_s10, %s2387_s25  ;;  %s3320_s3 = sld [smem:[#allocation45_spill]] }
  0x67   : > { %s2937_s21 = scalar_lea.vmem %s3315_s11, %s2387_s25  ;;  %s3322_s5 = sld [smem:[#allocation47_spill]] }
  0x68   : > { %3316 = sst [smem:[#allocation28_spill]] %s2937_s21 }
  0x69   : > { %s2942_s30 = scalar_lea.vmem %s3317_s1, %s2387_s25  ;;  %s3321_s21 = sld [smem:[#allocation46_spill]] }
  0x6a   : > { %s2947_s18 = scalar_lea.vmem %s3318_s20, %s2387_s25  ;;  %s2971_s20 = scalar_lea.vmem [#allocation7], %s2874_s12 }
  0x6b   : > { %s2952_s14 = scalar_lea.vmem %s3319_s17, %s2387_s25  ;;  %s3323_s7 = sld [smem:[#allocation15_spill]] }
  0x6c   : > { %s1053_s29 = scalar_lea.vmem %s3320_s3, %s2887_s23 }
  0x6d   : > { %s1061_s0 = scalar_lea.vmem %s3322_s5, %s2887_s23 }
  0x6f   : > { %s1057_s2 = scalar_lea.vmem %s3321_s21, %s2887_s23 }
  0x71   : > { %p2349_p4 = scmp.ne.s32.totalorder %s3323_s7, 0 }
  0x72   : > { %s3324_s8 = sld [smem:[#allocation25_spill]] (!%p2349_p4) }
  0x73   : > { %1065 = sbr.rel (%p2349_p4) target bundleno = 124 (0x7c), region = 142 }
  0x78   : > { %v1066_v6 = vld [vmem:[%s3324_s8] sm:$0xff]  ;;  %v1067_v7 = vld [vmem:[%s3324_s8 + $0x8] sm:$0x1]  ;;  %v2671_v8 = vmov 0.0  }
  0x79   : > { %1068 = vst [vmem:[%s2968_s28] sm:$0xff] %v1066_v6 }
  0x7a   : > { %1069 = vst [vmem:[%s2968_s28 + $0x8] sm:$0x1] %v1067_v7 }
  0x7b   : > { %1070 = vst [vmem:[%s2971_s20] sm:$0x1] %v2671_v8 }
  0x7c PF: > { %s3325_s5 = sld [smem:[#allocation26_spill]]  ;;  %vm1090_vm0 = vcmask 1040384   ;;  %v1080_v10 = vld [vmem:[%s996_s16] sm:$0xf]  ;;  %v2672_v11 = vmov 0   ;;  %vm1086_vm1 = vcmask 72704  }
  0x7d   : > { %2493 = vset.pattern.permute.xlu0 %v2672_v11  ;;  %2494 = vset.pattern.permute.xlu1 %v2672_v11  ;;  %v1300_v14 = vld [vmem:[%s2922_s22] sm:$0xff]  ;;  %v1305_v15 = vld [vmem:[%s2922_s22 + $0x28] sm:$0xff]  ;;  %v1363_v16 = vld [vmem:[%s2927_s26 + $0x38] sm:$0xff]  ;;  %vm1185_vm2 = vcmask 1044480   ;;  %vm1160_vm3 = vcmask 367616   ;;  %s3326_s9 = sld [smem:[#allocation27_spill]] }
  0x7e   : > { %1083 = vperm.xlu0 %2493, %v1080_v10   ;;  %2495 = vset.pattern.permute.xlu2 %v2672_v11  ;;  %v1301_v17 = vld [vmem:[%s2922_s22 + $0x8] sm:$0xff]  ;;  %v1302_v19 = vld [vmem:[%s2922_s22 + $0x10] sm:$0xff]  ;;  %v1303_v24 = vld [vmem:[%s2922_s22 + $0x18] sm:$0xff]  ;;  %vm1255_vm4 = vcmask 1043456   ;;  %vm1230_vm5 = vcmask 31744   ;;  %s3328_s16 = sld [smem:[#allocation32_spill]] }
  0x7f   : > { %1315 = vperm.xlu1 %2494, %v1301_v17   ;;  %v1361_v18 = vld [vmem:[%s2927_s26 + $0x28] sm:$0xff]  ;;  %v1306_v21 = vld [vmem:[%s2922_s22 + $0x30] sm:$0xff]  ;;  %1325 = vperm.xlu2 %2495, %v1303_v24   ;;  %v1304_v27 = vld [vmem:[%s2922_s22 + $0x20] sm:$0xff]  ;;  %vm1602_vm10 = vcmask 523264   ;;  %s3334_s3 = sld [smem:[#allocation44_spill]]  ;;  %s1963_s10 = sshll.u32 %s2968_s28, 4  ;;  %s1964_s10 = int_to_ptr.vmem [resolvable:$true] %s1963_s10 }
  0x80   : > { %v1071_v12 = vld [vmem:[%s2968_s28] sm:$0xff]  ;;  %v1369_v20 = vld [vmem:[%s2932_s24 + $0x28] sm:$0xff]  ;;  %v1359_v29 = vld [vmem:[%s2927_s26 + $0x18] sm:$0xff]  ;;  %s3337_s7 = sld [smem:[#allocation16_spill]]  ;;  %s1948_s13 = scalar_lea.sflag [#allocation4], %s2874_s12 }
  0x81   : > { %v1072_v9 = vld [vmem:[%s2968_s28 + $0x8] sm:$0x1]  ;;  %v1358_v22 = vld [vmem:[%s2927_s26 + $0x10] sm:$0xff]  ;;  %v1364_v28 = vld [vmem:[%s2932_s24] sm:$0xff] }
  0x82   : > { %2350 = vmatpush.msk.msra.mxu0 %vm1090_vm0, %v1072_v9  ;;  %v1079_v13 = vld [vmem:[%s3325_s5] sm:$0xf]  ;;  %2352 = vmatpush.msk.msra.mxu1 %vm1090_vm0, %v1072_v9  ;;  %v1362_v23 = vld [vmem:[%s2927_s26 + $0x30] sm:$0xff]  ;;  %v1307_v30 = vld [vmem:[%s2922_s22 + $0x38] sm:$0xff]  ;;  %s3338_s5 = sld [smem:[#allocation48_spill]] }
  0x83   : > { %v1366_v25 = vld [vmem:[%s2932_s24 + $0x10] sm:$0xff]  ;;  %v1367_v32 = vld [vmem:[%s2932_s24 + $0x18] sm:$0xff]  ;;  %v1559_v34 = vld [vmem:[%s2942_s30 + $0x28] sm:$0xff] }
  0x84   : > { %1109 = vmatpush.msra.mxu0 %v1071_v12  ;;  %1139 = vmatpush.msra.mxu1 %v1071_v12  ;;  %v1370_v26 = vld [vmem:[%s2932_s24 + $0x30] sm:$0xff]  ;;  %v1371_v33 = vld [vmem:[%s2932_s24 + $0x38] sm:$0xff]  ;;  %v1356_v35 = vld [vmem:[%s2927_s26] sm:$0xff]  ;;  %s3329_s25 = scalar_lea.vmem %s3328_s16, %s2887_s23 }
  0x85   : > { %2351 = vmatmul.msk.f32.vlgmr.msra.gmra.mxu0 %vm1086_vm1, %v1079_v13  ;;  %v1556_v31 = vld [vmem:[%s2942_s30 + $0x10] sm:$0xff]  ;;  %v1360_v36 = vld [vmem:[%s2927_s26 + $0x20] sm:$0xff]  ;;  %v1675_v37 = vld [vmem:[%s2947_s18 + $0x38] sm:$0xff] }
  0x86   : > { %1310 = vperm.xlu0 %2493, %v1300_v14   ;;  %v1078_v38 = vld [vmem:[%s2966_s6 + $0x28] sm:$0x1f]  ;;  %v1077_v39 = vld [vmem:[%s2966_s6 + $0x20] sm:$0xff]  ;;  %v1076_v41 = vld [vmem:[%s2966_s6 + $0x18] sm:$0xff]  ;;  %s2384_s8 = sshll.u32 %s3337_s7, 3 }
  0x87   : > { %1320 = vperm.xlu1 %2494, %v1302_v19   ;;  %1330 = vperm.xlu2 %2495, %v1304_v27   ;;  %v1554_v40 = vld [vmem:[%s2942_s30] sm:$0xff]  ;;  %v1673_v44 = vld [vmem:[%s2947_s18 + $0x28] sm:$0xff]  ;;  %v1557_v48 = vld [vmem:[%s2942_s30 + $0x18] sm:$0xff] }
  0x88   : > { %2354 = vmatpush.msk.msra.mxu2 %vm1185_vm2, %v1078_v38  ;;  %v1368_v42 = vld [vmem:[%s2932_s24 + $0x20] sm:$0xff]  ;;  %v1074_v45 = vld [vmem:[%s2966_s6 + $0x8] sm:$0xff]  ;;  %v1560_v52 = vld [vmem:[%s2942_s30 + $0x30] sm:$0xff] }
  0x89   : > { %v1075_v43 = vld [vmem:[%s2966_s6 + $0x10] sm:$0xff]  ;;  %v1073_v46 = vld [vmem:[%s2966_s6] sm:$0xff]  ;;  %v1357_v49 = vld [vmem:[%s2927_s26 + $0x8] sm:$0xff]  ;;  %s2556_s26 = scalar_lea.hbm %s3338_s5, 32 }
  0x8a   : > { %1200 = vmatpush.msra.mxu2 %v1077_v39  ;;  %v1152_v47 = vld [vmem:[%s2917_s4] sm:$0xff]  ;;  %v1681_v50 = vld [vmem:[%s2952_s14 + $0x28] sm:$0xff]  ;;  %v1670_v54 = vld [vmem:[%s2947_s18 + $0x10] sm:$0xff] }
  0x8b   : > { %v1153_v51 = vld [vmem:[%s2917_s4 + $0x8] sm:$0xff]  ;;  %v1154_v55 = vld [vmem:[%s2917_s4 + $0x10] sm:$0xff]  ;;  %v1155_v59 = vld [vmem:[%s2917_s4 + $0x18] sm:$0xff] }
  0x8c   : > { %1201 = vmatpush.msra.mxu2 %v1076_v41  ;;  %v1365_v53 = vld [vmem:[%s2932_s24 + $0x8] sm:$0xff]  ;;  %v1674_v56 = vld [vmem:[%s2947_s18 + $0x30] sm:$0xff]  ;;  %v1558_v61 = vld [vmem:[%s2942_s30 + $0x20] sm:$0xff] }
  0x8d   : > { %v1555_v57 = vld [vmem:[%s2942_s30 + $0x8] sm:$0xff]  ;;  %v1678_v58 = vld [vmem:[%s2952_s14 + $0x10] sm:$0xff]  ;;  %v1676_v62 = vld [vmem:[%s2952_s14] sm:$0xff] }
  0x8e   : > { %1335 = vperm.xlu0 %2493, %v1305_v15   ;;  %1202 = vmatpush.msra.mxu2 %v1075_v43  ;;  %v1682_v60 = vld [vmem:[%s2952_s14 + $0x30] sm:$0xff]  ;;  %v1144_v2 = vld [vmem:[%s3326_s9] sm:$0xff]  ;;  %v1671_v4 = vld [vmem:[%s2947_s18 + $0x18] sm:$0xff] }
  0x8f   : > { %1340 = vperm.xlu1 %2494, %v1306_v21   ;;  %1345 = vperm.xlu2 %2495, %v1307_v30   ;;  %v1156_v3 = vld [vmem:[%s2917_s4 + $0x20] sm:$0xff]  ;;  %v1561_v5 = vld [vmem:[%s2942_s30 + $0x38] sm:$0xff]  ;;  %v1145_v7 = vld [vmem:[%s3326_s9 + $0x8] sm:$0xff] }
  0x90   : > { %1203 = vmatpush.msra.mxu2 %v1074_v45  ;;  %v1852_v6 = vld [vmem:[%s1053_s29] sm:$0x1f]  ;;  %v1157_v8 = vld [vmem:[%s2917_s4 + $0x28] sm:$0xff]  ;;  %v1679_v9 = vld [vmem:[%s2952_s14 + $0x18] sm:$0xff]  ;;  %s3335_s29 = scalar_lea.vmem %s3334_s3, %s2887_s23 }
  0x91   : > { %v1683_v10 = vld [vmem:[%s2952_s14 + $0x38] sm:$0xff]  ;;  %v1146_v11 = vld [vmem:[%s3326_s9 + $0x10] sm:$0xff]  ;;  %v1114_v12 = vld [vmem:[%s3329_s25] sm:$0x1f] }
  0x92   : > { %1204 = vmatpush.msra.mxu2 %v1073_v46  ;;  %v1158_v13 = vld [vmem:[%s2917_s4 + $0x30] sm:$0xff]  ;;  %2353 = vmatmul.msk.f32.vlgmr.msra.gmra.mxu1 %vm1086_vm1, %v1114_v12  ;;  %v1668_v14 = vld [vmem:[%s2947_s18] sm:$0xff]  ;;  %v1159_v17 = vld [vmem:[%s2917_s4 + $0x38] sm:$0xff] }
  0x93   : > { %2355 = vmatmul.msk.f32.vlgmr.msra.gmra.mxu2 %vm1160_vm3, %v1152_v47  ;;  %v1672_v15 = vld [vmem:[%s2947_s18 + $0x20] sm:$0xff]  ;;  %v1669_v21 = vld [vmem:[%s2947_s18 + $0x8] sm:$0xff]  ;;  %v1150_v24 = vld [vmem:[%s3326_s9 + $0x30] sm:$0xff]  ;;  %s3333_s18 = sld [smem:[#allocation28_spill]] }
  0x94   : > { %v1680_v19 = vld [vmem:[%s2952_s14 + $0x20] sm:$0xff] }
  0x96   : > { %1479 = vperm.xlu0 %2493, %v1363_v16   ;;  %v1147_v16 = vld [vmem:[%s3326_s9 + $0x18] sm:$0xff] }
  0x97   : > { %1474 = vperm.xlu1 %2494, %v1362_v23   ;;  %1527 = vperm.xlu2 %2495, %v1371_v33   ;;  %v1677_v23 = vld [vmem:[%s2952_s14 + $0x8] sm:$0xff] }
  0x9b   : > { %2356 = vmatmul.msk.f32.gmra.mxu2 %vm1160_vm3, %v1153_v51 }
  0x9e   : > { %1469 = vperm.xlu0 %2493, %v1361_v18   ;;  %v1882_v18 = vld [vmem:[%s1061_s0] sm:$0x1f]  ;;  %s3331_s0 = sld [smem:[#allocation34_spill]] }
  0x9f   : > { %1522 = vperm.xlu1 %2494, %v1370_v26   ;;  %1464 = vperm.xlu2 %2495, %v1360_v36   ;;  %v1151_v26 = vld [vmem:[%s3326_s9 + $0x38] sm:$0xff] }
  0xa3   : > { %2357 = vmatmul.msk.f32.gmra.mxu2 %vm1160_vm3, %v1154_v55 }
  0xa4   : > { %s3332_s30 = scalar_lea.vmem %s3331_s0, %s2887_s23 }
  0xa6   : > { %1517 = vperm.xlu0 %2493, %v1369_v20   ;;  %v1148_v20 = vld [vmem:[%s3326_s9 + $0x20] sm:$0xff] }
  0xa7   : > { %1459 = vperm.xlu1 %2494, %v1359_v29   ;;  %1512 = vperm.xlu2 %2495, %v1368_v42  }
  0xab   : > { %2358 = vmatmul.msk.f32.gmra.mxu2 %vm1160_vm3, %v1155_v59 }
  0xae   : > { %1454 = vperm.xlu0 %2493, %v1358_v22   ;;  %v1149_v22 = vld [vmem:[%s3326_s9 + $0x28] sm:$0xff]  ;;  %s1962_s9 = scalar_lea.hbm %s3338_s5, %s2384_s8 }
  0xaf   : > { %1507 = vperm.xlu1 %2494, %v1367_v32   ;;  %1449 = vperm.xlu2 %2495, %v1357_v49   ;;  %s1965_s15 = sshll.u32 %s1962_s9, 4  ;;  %s1966_s15 = int_to_ptr.hbm [resolvable:$true] %s1965_s15 }
  0xb0   : > { %s2550_s19 = sshra.s32 %s1966_s15, 4  ;;  %s2551_s19 = int_to_ptr.hbm [resolvable:$true] %s2550_s19 }
  0xb1   : > { %s2552_s16 = scalar_lea.hbm %s2551_s19, 16  ;;  %p2557_p8 = scmp.lt.s32.totalorder %s2551_s19, %s3338_s5 }
  0xb2   : > { %p2553_p5 = scmp.ne.s32.totalorder %s2551_s19, %s2552_s16  ;;  %p2558_p9 = scmp.lt.s32.totalorder %s2556_s26, %s2552_s16 }
  0xb3   : > { %2359 = vmatmul.msk.f32.gmra.mxu2 %vm1160_vm3, %v1156_v3 }
  0xb4   : > { %p2554_p6 = pnand %p2553_p5, %p2845_p10  ;;  %p2559_p12 = por %p2558_p9, %p2557_p8 }
  0xb6   : > { %1502 = vperm.xlu0 %2493, %v1366_v25   ;;  %v1115_v25 = vld [vmem:[%s3332_s30] sm:$0x1f]  ;;  %p2555_p7 = pneg %p2554_p6 }
  0xb7   : > { %1444 = vperm.xlu1 %2494, %v1356_v35   ;;  %1497 = vperm.xlu2 %2495, %v1365_v53  }
  0xb8   : > { %p2560_p13 = pnand %p2559_p12, %p2555_p7 }
  0xbb   : > { %2360 = vmatmul.msk.f32.gmra.mxu2 %vm1160_vm3, %v1157_v8 }
  0xbe   : > { %1492 = vperm.xlu0 %2493, %v1364_v28  }
  0xbf   : > { %1564 = vperm.xlu1 %2494, %v1554_v40   ;;  %1569 = vperm.xlu2 %2495, %v1555_v57  }
  0xc3   : > { %2361 = vmatmul.msk.f32.gmra.mxu2 %vm1160_vm3, %v1158_v13 }
  0xc6   : > { %1574 = vperm.xlu0 %2493, %v1556_v31  }
  0xc7   : > { %1579 = vperm.xlu1 %2494, %v1557_v48   ;;  %1584 = vperm.xlu2 %2495, %v1558_v61  }
  0xcb   : > { %2362 = vmatmul.msk.f32.gmra.mxu2 %vm1160_vm3, %v1159_v17 }
  0xce   : > { %1589 = vperm.xlu0 %2493, %v1559_v34  }
  0xcf   : > { %1594 = vperm.xlu1 %2494, %v1560_v52   ;;  %1599 = vperm.xlu2 %2495, %v1561_v5   ;;  %v2673_v52 = vmov 64.0  }
  0xd0   : > { %2496 = vrcp.f32 %v2673_v52 }
  0xd6   : > { %1784 = vperm.xlu0 %2493, %v1675_v37  }
  0xd7   : > { %1779 = vperm.xlu1 %2494, %v1674_v56   ;;  %1832 = vperm.xlu2 %2495, %v1683_v10  }
  0xd9   : > { %v1326_v39 = vpop.permute.xlu2 %1325 }
  0xde   : > { %1774 = vperm.xlu0 %2493, %v1673_v44  }
  0xdf   : > { %1827 = vperm.xlu1 %2494, %v1682_v60   ;;  %1769 = vperm.xlu2 %2495, %v1672_v15  }
  0xe1   : > { %v1331_v53 = vpop.permute.xlu2 %1330 }
  0xe6   : > { %1822 = vperm.xlu0 %2493, %v1681_v50  }
  0xe7   : > { %1764 = vperm.xlu1 %2494, %v1671_v4   ;;  %1817 = vperm.xlu2 %2495, %v1680_v19  }
  0xee   : > { %1759 = vperm.xlu0 %2493, %v1670_v54  }
  0xef   : > { %1812 = vperm.xlu1 %2494, %v1679_v9   ;;  %1754 = vperm.xlu2 %2495, %v1669_v21   ;;  %v1346_v9 = vpop.permute.xlu2 %1345 }
  0xf0   : > { %v1084_v63 = vpop.permute.xlu0 %1083 }
  0xf1   : > { %v1316_v37 = vpop.permute.xlu1 %1315 }
  0xf6   : > { %1807 = vperm.xlu0 %2493, %v1678_v58  }
  0xf7   : > { %1749 = vperm.xlu1 %2494, %v1668_v14   ;;  %1802 = vperm.xlu2 %2495, %v1677_v23  }
  0xf8   : > { %v1311_v42 = vpop.permute.xlu0 %1310 }
  0xf9   : > { %v1321_v45 = vpop.permute.xlu1 %1320 }
  0xfe   : > { %1797 = vperm.xlu0 %2493, %v1676_v62   ;;  %v2497_v62 = vpop.eup %2496 }
  0xff   : > { %1885 = vperm.xlu1 %2494, %v1882_v18   ;;  %1118 = vperm.xlu2 %2495, %v1115_v25   ;;  %vm1390_vm6 = vweird.f32 %v2497_v62 }
 0x100   : > { %v1336_v61 = vpop.permute.xlu0 %1335 }
 0x102   : > { %v1111_v0 = vpop.f32.mrf.mxu0 }
 0x103   : > { %v1112_v1 = vadd.f32 %v1111_v0, %v1084_v63 }
 0x105   : > { %1933 = vst [vmem:[%s2968_s28] sm:$0xf] %v1112_v1  ;;  %2363 = vmatpush.msk.msra.mxu3 %vm1255_vm4, %v1112_v1  ;;  %v1341_v1 = vpop.permute.xlu1 %1340 }
 0x106   : > { %2364 = vmatmul.msk.f32.vlgmr.msra.gmra.mxu3 %vm1230_vm5, %v1144_v2  ;;  %1855 = vperm.xlu0 %2493, %v1852_v6   ;;  %v1386_v6 = vmul.f32 64.0, %v2497_v62 }
 0x108   : > { %v1387_v12 = vsub.f32 1.0, %v1386_v6 }
 0x10a   : > { %v1388_v15 = vmul.f32 %v2497_v62, %v1387_v12 }
 0x10c   : > { %v1389_v18 = vadd.f32 %v2497_v62, %v1388_v15 }
 0x10e   : > { %2365 = vmatmul.msk.f32.gmra.mxu3 %vm1230_vm5, %v1145_v7  ;;  %v3092_v21 = vsel %vm1390_vm6, %v2497_v62, %v1389_v18 }
 0x116   : > { %2366 = vmatmul.msk.f32.gmra.mxu3 %vm1230_vm5, %v1146_v11  ;;  %v1206_v27 = vpop.f32.mrf.mxu2 }
 0x11e   : > { %2367 = vmatmul.msk.f32.gmra.mxu3 %vm1230_vm5, %v1147_v16  ;;  %v1209_v28 = vpop.f32.mrf.mxu2 }
 0x126   : > { %2368 = vmatmul.msk.f32.gmra.mxu3 %vm1230_vm5, %v1148_v20  ;;  %v1212_v30 = vpop.f32.mrf.mxu2 }
 0x12e   : > { %2369 = vmatmul.msk.f32.gmra.mxu3 %vm1230_vm5, %v1149_v22  ;;  %v1215_v32 = vpop.f32.mrf.mxu2 }
 0x136   : > { %2370 = vmatmul.msk.f32.gmra.mxu3 %vm1230_vm5, %v1150_v24  ;;  %v1218_v35 = vpop.f32.mrf.mxu2 }
 0x13e   : > { %2371 = vmatmul.msk.f32.gmra.mxu3 %vm1230_vm5, %v1151_v26  ;;  %v1221_v38 = vpop.f32.mrf.mxu2 }
 0x146   : > { %v1224_v46 = vpop.f32.mrf.mxu2 }
 0x14e   : > { %v1227_v2 = vpop.f32.mrf.mxu2 }
 0x189   : > { %v1276_v29 = vpop.f32.mrf.mxu3 }
 0x18a   : > { %v1277_v43 = vadd.f32 %v1276_v29, %v1206_v27 }
 0x18c   : > { %v1348_v49 = vadd.f32 %v1311_v42, %v1277_v43 }
 0x191   : > { %v1279_v31 = vpop.f32.mrf.mxu3 }
 0x192   : > { %v1280_v41 = vadd.f32 %v1279_v31, %v1209_v28 }
 0x194   : > { %v1349_v47 = vadd.f32 %v1316_v37, %v1280_v41 }
 0x196   : > { %v1372_v55 = vadd.f32 %v1349_v47, %v1348_v49 }
 0x199   : > { %v1282_v33 = vpop.f32.mrf.mxu3 }
 0x19a   : > { %v1283_v44 = vadd.f32 %v1282_v33, %v1212_v30 }
 0x19c   : > { %v1350_v50 = vadd.f32 %v1321_v45, %v1283_v44 }
 0x19e   : > { %v1373_v58 = vadd.f32 %v1372_v55, %v1350_v50 }
 0x1a1   : > { %v1285_v34 = vpop.f32.mrf.mxu3 }
 0x1a2   : > { %v1286_v48 = vadd.f32 %v1285_v34, %v1215_v32 }
 0x1a4   : > { %v1351_v56 = vadd.f32 %v1326_v39, %v1286_v48 }
 0x1a6   : > { %v1374_v63 = vadd.f32 %v1373_v58, %v1351_v56 }
 0x1a9   : > { %v1288_v36 = vpop.f32.mrf.mxu3 }
 0x1aa   : > { %v1289_v51 = vadd.f32 %v1288_v36, %v1218_v35 }
 0x1ac   : > { %v1352_v59 = vadd.f32 %v1331_v53, %v1289_v51  ;;  %v1475_v51 = vpop.permute.xlu1 %1474  ;;  %v1528_v53 = vpop.permute.xlu2 %1527 }
 0x1ae   : > { %v1375_v3 = vadd.f32 %v1374_v63, %v1352_v59 }
 0x1b1   : > { %v1291_v40 = vpop.f32.mrf.mxu3 }
 0x1b2   : > { %v1292_v57 = vadd.f32 %v1291_v40, %v1221_v38 }
 0x1b4   : > { %v1353_v0 = vadd.f32 %v1336_v61, %v1292_v57 }
 0x1b6   : > { %v1376_v7 = vadd.f32 %v1375_v3, %v1353_v0 }
 0x1b9   : > { %v1294_v54 = vpop.f32.mrf.mxu3 }
 0x1ba   : > { %v1295_v60 = vadd.f32 %v1294_v54, %v1224_v46 }
 0x1bc   : > { %v1354_v4 = vadd.f32 %v1341_v1, %v1295_v60  ;;  %v1465_v60 = vpop.permute.xlu2 %1464 }
 0x1be   : > { %v1377_v10 = vadd.f32 %v1376_v7, %v1354_v4 }
 0x1c1   : > { %v1297_v5 = vpop.f32.mrf.mxu3 }
 0x1c2   : > { %v1298_v8 = vadd.f32 %v1297_v5, %v1227_v2 }
 0x1c4   : > { %v1355_v11 = vadd.f32 %v1346_v9, %v1298_v8  ;;  %v1513_v2 = vpop.permute.xlu2 %1512 }
 0x1c6   : > { %v1378_v13 = vadd.f32 %v1377_v10, %v1355_v11 }
 0x1c8   : > { %v1379_v14 = vrot.slane %v1378_v13, 4 }
 0x1ca   : > { %v1380_v16 = vadd.f32 %v1379_v14, %v1378_v13 }
 0x1cc   : > { %v1381_v17 = vrot.slane %v1380_v16, 2 }
 0x1ce   : > { %v1382_v19 = vadd.f32 %v1381_v17, %v1380_v16  ;;  %v1450_v17 = vpop.permute.xlu2 %1449 }
 0x1d0   : > { %v1383_v20 = vrot.slane %v1382_v19, 1 }
 0x1d2   : > { %v1384_v22 = vadd.f32 %v1383_v20, %v1382_v19 }
 0x1d4   : > { %v1392_v23 = vmul.f32 %v3092_v21, %v1384_v22 }
 0x1d6   : > { %v3095_v24 = vsub.f32 %v1348_v49, %v1392_v23  ;;  %v3097_v25 = vsub.f32 %v1349_v47, %v1392_v23  ;;  %v3099_v26 = vsub.f32 %v1350_v50, %v1392_v23  ;;  %v1396_v27 = vsub.f32 %v1351_v56, %v1392_v23  ;;  %v1480_v47 = vpop.permute.xlu0 %1479 }
 0x1d7   : > { %v1397_v30 = vsub.f32 %v1352_v59, %v1392_v23  ;;  %v1398_v33 = vsub.f32 %v1353_v0, %v1392_v23  ;;  %v1399_v36 = vsub.f32 %v1354_v4, %v1392_v23  ;;  %v1400_v39 = vsub.f32 %v1355_v11, %v1392_v23  ;;  %v1523_v59 = vpop.permute.xlu1 %1522 }
 0x1d8   : > { %v1401_v28 = vmul.f32 %v3095_v24, %v3095_v24  ;;  %v1402_v29 = vmul.f32 %v3097_v25, %v3097_v25  ;;  %v1403_v31 = vmul.f32 %v3099_v26, %v3099_v26  ;;  %v1404_v34 = vmul.f32 %v1396_v27, %v1396_v27 }
 0x1d9   : > { %v1405_v37 = vmul.f32 %v1397_v30, %v1397_v30  ;;  %v1406_v40 = vmul.f32 %v1398_v33, %v1398_v33  ;;  %v1407_v42 = vmul.f32 %v1399_v36, %v1399_v36  ;;  %v1408_v44 = vmul.f32 %v1400_v39, %v1400_v39 }
 0x1da   : > { %v1409_v32 = vadd.f32 %v1402_v29, %v1401_v28 }
 0x1dc   : > { %v1410_v35 = vadd.f32 %v1409_v32, %v1403_v31 }
 0x1de   : > { %v1411_v38 = vadd.f32 %v1410_v35, %v1404_v34  ;;  %v1470_v55 = vpop.permute.xlu0 %1469 }
 0x1df   : > { %v1460_v0 = vpop.permute.xlu1 %1459 }
 0x1e0   : > { %v1412_v41 = vadd.f32 %v1411_v38, %v1405_v37 }
 0x1e2   : > { %v1413_v43 = vadd.f32 %v1412_v41, %v1406_v40  ;;  %v1498_v41 = vpop.permute.xlu2 %1497 }
 0x1e4   : > { %v1414_v45 = vadd.f32 %v1413_v43, %v1407_v42 }
 0x1e6   : > { %v1415_v46 = vadd.f32 %v1414_v45, %v1408_v44  ;;  %v1518_v61 = vpop.permute.xlu0 %1517 }
 0x1e7   : > { %v1508_v12 = vpop.permute.xlu1 %1507 }
 0x1e8   : > { %v1416_v48 = vrot.slane %v1415_v46, 4 }
 0x1ea   : > { %v1417_v49 = vadd.f32 %v1416_v48, %v1415_v46  ;;  %v1552_v48 = vld [vmem:[%s3333_s18 + $0x30] sm:$0xff] }
 0x1ec   : > { %v1418_v50 = vrot.slane %v1417_v49, 2 }
 0x1ee   : > { %v1419_v52 = vadd.f32 %v1418_v50, %v1417_v49  ;;  %v1455_v4 = vpop.permute.xlu0 %1454  ;;  %v1547_v49 = vld [vmem:[%s3333_s18 + $0x8] sm:$0xff]  ;;  %v1553_v50 = vld [vmem:[%s3333_s18 + $0x38] sm:$0xff] }
 0x1ef   : > { %v1445_v38 = vpop.permute.xlu1 %1444 }
 0x1f0   : > { %v1420_v54 = vrot.slane %v1419_v52, 1 }
 0x1f2   : > { %v1421_v56 = vadd.f32 %v1420_v54, %v1419_v52  ;;  %v1549_v52 = vld [vmem:[%s3333_s18 + $0x18] sm:$0xff]  ;;  %v1551_v54 = vld [vmem:[%s3333_s18 + $0x28] sm:$0xff] }
 0x1f4   : > { %v1422_v57 = vmul.f32 %v1421_v56, %v3092_v21 }
 0x1f6   : > { %v1423_v58 = vadd.f32 1e-05, %v1422_v57  ;;  %v1503_v23 = vpop.permute.xlu0 %1502 }
 0x1f8   : > { %2498 = vrsqrt.f32 %v1423_v58  ;;  %vm1430_vm8 = vweird.f32 %v1423_v58 }
 0x1fe   : > { %v2499_v62 = vpop.eup %2498  ;;  %v1493_v43 = vpop.permute.xlu0 %1492 }
 0x1ff   : > { %v1425_v63 = vmul.f32 %v2499_v62, %v1423_v58  ;;  %vm1431_vm7 = vweird.f32 %v2499_v62  ;;  %v1565_v58 = vpop.permute.xlu1 %1564 }
 0x200   : > { %vm1432_vm9 = vmor %vm1430_vm8, %vm1431_vm7 }
 0x201   : > { %v1426_v1 = vmul.f32 %v2499_v62, %v1425_v63 }
 0x203   : > { %v1427_v3 = vmul.f32 0.5, %v1426_v1 }
 0x205   : > { %v1428_v5 = vsub.f32 1.5, %v1427_v3 }
 0x207   : > { %v1429_v6 = vmul.f32 %v2499_v62, %v1428_v5  ;;  %v1580_v63 = vpop.permute.xlu1 %1579 }
 0x209   : > { %v1433_v7 = vsel %vm1432_vm9, %v2499_v62, %v1429_v6  ;;  %v1575_v62 = vpop.permute.xlu0 %1574 }
 0x20a   : > { %v1441_v8 = vmul.f32 %v1433_v7, %v1400_v39  ;;  %v1440_v9 = vmul.f32 %v1433_v7, %v1399_v36  ;;  %v1439_v10 = vmul.f32 %v1433_v7, %v1398_v33  ;;  %v1438_v11 = vmul.f32 %v1433_v7, %v1397_v30 }
 0x20b   : > { %v1437_v16 = vmul.f32 %v1433_v7, %v1396_v27  ;;  %v1436_v22 = vmul.f32 %v1433_v7, %v3099_v26  ;;  %v1435_v32 = vmul.f32 %v1433_v7, %v3097_v25  ;;  %v1434_v35 = vmul.f32 %v1433_v7, %v3095_v24 }
 0x20c   : > { %v1489_v13 = vmul.f32 %v1480_v47, %v1441_v8  ;;  %v1488_v14 = vmul.f32 %v1475_v51, %v1440_v9  ;;  %v1487_v15 = vmul.f32 %v1470_v55, %v1439_v10  ;;  %v1486_v20 = vmul.f32 %v1465_v60, %v1438_v11  ;;  %v1546_v47 = vld [vmem:[%s3333_s18] sm:$0xff]  ;;  %v1548_v51 = vld [vmem:[%s3333_s18 + $0x10] sm:$0xff]  ;;  %v3127_v60 = vpop.f32.mrf.mxu1 }
 0x20d   : > { %v1485_v31 = vmul.f32 %v1460_v0, %v1437_v16  ;;  %v1484_v34 = vmul.f32 %v1455_v4, %v1436_v22  ;;  %v1483_v37 = vmul.f32 %v1450_v17, %v1435_v32  ;;  %v1482_v40 = vmul.f32 %v1445_v38, %v1434_v35 }
 0x20e   : > { %v1537_v18 = vadd.f32 %v1528_v53, %v1489_v13  ;;  %v1536_v19 = vadd.f32 %v1523_v59, %v1488_v14  ;;  %v1535_v29 = vadd.f32 %v1518_v61, %v1487_v15  ;;  %v1534_v33 = vadd.f32 %v1513_v2, %v1486_v20  ;;  %v1550_v53 = vld [vmem:[%s3333_s18 + $0x20] sm:$0xff]  ;;  %v1570_v59 = vpop.permute.xlu2 %1569 }
 0x20f   : > { %v1533_v36 = vadd.f32 %v1508_v12, %v1485_v31  ;;  %v1532_v39 = vadd.f32 %v1503_v23, %v1484_v34  ;;  %v1531_v42 = vadd.f32 %v1498_v41, %v1483_v37  ;;  %v1530_v44 = vadd.f32 %v1493_v43, %v1482_v40  ;;  %v1595_v15 = vpop.permute.xlu1 %1594 }
 0x210   : > { %v1545_v28 = vmax.f32 %v1537_v18, 0.0  ;;  %v1544_v30 = vmax.f32 %v1536_v19, 0.0  ;;  %v1543_v27 = vmax.f32 %v1535_v29, 0.0  ;;  %v1542_v26 = vmax.f32 %v1534_v33, 0.0 }
 0x211   : > { %v1541_v25 = vmax.f32 %v1533_v36, 0.0  ;;  %v1540_v24 = vmax.f32 %v1532_v39, 0.0  ;;  %v1539_v45 = vmax.f32 %v1531_v42, 0.0  ;;  %v1538_v46 = vmax.f32 %v1530_v44, 0.0  ;;  %v1590_v11 = vpop.permute.xlu0 %1589 }
 0x212   : > { %1635 = vmatpush.msrb.mxu0 %v1545_v28  ;;  %2396 = vmatpush.msrb.mxu1 %v1545_v28 }
 0x214   : > { %1636 = vmatpush.msrb.mxu0 %v1544_v30  ;;  %2397 = vmatpush.msrb.mxu1 %v1544_v30 }
 0x216   : > { %1637 = vmatpush.msrb.mxu0 %v1543_v27  ;;  %2398 = vmatpush.msrb.mxu1 %v1543_v27  ;;  %v1585_v5 = vpop.permute.xlu2 %1584 }
 0x218   : > { %1638 = vmatpush.msrb.mxu0 %v1542_v26  ;;  %2399 = vmatpush.msrb.mxu1 %v1542_v26 }
 0x21a   : > { %1639 = vmatpush.msrb.mxu0 %v1541_v25  ;;  %2400 = vmatpush.msrb.mxu1 %v1541_v25 }
 0x21c   : > { %1640 = vmatpush.msrb.mxu0 %v1540_v24  ;;  %2401 = vmatpush.msrb.mxu1 %v1540_v24 }
 0x21e   : > { %1641 = vmatpush.msrb.mxu0 %v1539_v45  ;;  %2402 = vmatpush.msrb.mxu1 %v1539_v45  ;;  %v1600_v19 = vpop.permute.xlu2 %1599 }
 0x220   : > { %1642 = vmatpush.msrb.mxu0 %v1538_v46  ;;  %2403 = vmatpush.msrb.mxu1 %v1538_v46 }
 0x221   : > { %2372 = vmatmul.msk.f32.vlgmr.msrb.gmra.mxu0 %vm1602_vm10, %v1546_v47  ;;  %2378 = vmatmul.msk.f32.vlgmr.msrb.gmra.mxu1 %vm1602_vm10, %v1552_v48 }
 0x229   : > { %2373 = vmatmul.msk.f32.gmra.mxu0 %vm1602_vm10, %v1547_v49  ;;  %2379 = vmatmul.msk.f32.gmra.mxu1 %vm1602_vm10, %v1553_v50 }
 0x231   : > { %2374 = vmatmul.msk.f32.gmra.mxu0 %vm1602_vm10, %v1548_v51 }
 0x239   : > { %2375 = vmatmul.msk.f32.gmra.mxu0 %vm1602_vm10, %v1549_v52 }
 0x241   : > { %2376 = vmatmul.msk.f32.gmra.mxu0 %vm1602_vm10, %v1550_v53 }
 0x249   : > { %2377 = vmatmul.msk.f32.gmra.mxu0 %vm1602_vm10, %v1551_v54  ;;  %v1785_v54 = vpop.permute.xlu0 %1784 }
 0x29e   : > { %v1644_v55 = vpop.f32.mrf.mxu0  ;;  %v1662_v1 = vpop.f32.mrf.mxu1 }
 0x29f   : > { %v1645_v3 = vadd.f32 %v1644_v55, %v1565_v58  ;;  %v1663_v17 = vadd.f32 %v1662_v1, %v1595_v15  ;;  %v1780_v58 = vpop.permute.xlu1 %1779 }
 0x2a6   : > { %v1647_v56 = vpop.f32.mrf.mxu0  ;;  %v1665_v16 = vpop.f32.mrf.mxu1 }
 0x2a7   : > { %v1648_v0 = vadd.f32 %v1647_v56, %v1570_v59  ;;  %v1666_v20 = vadd.f32 %v1665_v16, %v1600_v19 }
 0x2a9   : > { %v1684_v6 = vadd.f32 %v1648_v0, %v1645_v3 }
 0x2ae   : > { %v1650_v57 = vpop.f32.mrf.mxu0 }
 0x2af   : > { %v1651_v4 = vadd.f32 %v1650_v57, %v1575_v62 }
 0x2b1   : > { %v1685_v8 = vadd.f32 %v1684_v6, %v1651_v4 }
 0x2b6   : > { %v1653_v61 = vpop.f32.mrf.mxu0 }
 0x2b7   : > { %v1654_v7 = vadd.f32 %v1653_v61, %v1580_v63  ;;  %v1833_v61 = vpop.permute.xlu2 %1832  ;;  %v1775_v63 = vpop.permute.xlu0 %1774 }
 0x2b9   : > { %v1686_v10 = vadd.f32 %v1685_v8, %v1654_v7 }
 0x2be   : > { %v1656_v2 = vpop.f32.mrf.mxu0 }
 0x2bf   : > { %v1657_v9 = vadd.f32 %v1656_v2, %v1585_v5  ;;  %v1823_v5 = vpop.permute.xlu0 %1822 }
 0x2c1   : > { %v1687_v13 = vadd.f32 %v1686_v10, %v1657_v9 }
 0x2c6   : > { %v1659_v12 = vpop.f32.mrf.mxu0 }
 0x2c7   : > { %v1660_v14 = vadd.f32 %v1659_v12, %v1590_v11  ;;  %v1760_v12 = vpop.permute.xlu0 %1759 }
 0x2c9   : > { %v1688_v18 = vadd.f32 %v1687_v13, %v1660_v14 }
 0x2cb   : > { %v1689_v22 = vadd.f32 %v1688_v18, %v1663_v17 }
 0x2cd   : > { %v1690_v23 = vadd.f32 %v1689_v22, %v1666_v20 }
 0x2cf   : > { %v1691_v28 = vrot.slane %v1690_v23, 4 }
 0x2d1   : > { %v1692_v29 = vadd.f32 %v1691_v28, %v1690_v23 }
 0x2d3   : > { %v1693_v31 = vrot.slane %v1692_v29, 2 }
 0x2d5   : > { %v1694_v32 = vadd.f32 %v1693_v31, %v1692_v29 }
 0x2d7   : > { %v1695_v30 = vrot.slane %v1694_v32, 1 }
 0x2d9   : > { %v1696_v33 = vadd.f32 %v1695_v30, %v1694_v32 }
 0x2db   : > { %v1697_v34 = vmul.f32 %v1696_v33, %v3092_v21 }
 0x2dd   : > { %v3130_v35 = vsub.f32 %v1645_v3, %v1697_v34  ;;  %v3132_v27 = vsub.f32 %v1648_v0, %v1697_v34  ;;  %v3134_v36 = vsub.f32 %v1651_v4, %v1697_v34  ;;  %v1701_v37 = vsub.f32 %v1654_v7, %v1697_v34  ;;  %v1828_v3 = vpop.permute.xlu1 %1827  ;;  %v1770_v4 = vpop.permute.xlu2 %1769 }
 0x2de   : > { %v1702_v39 = vsub.f32 %v1657_v9, %v1697_v34  ;;  %v1703_v25 = vsub.f32 %v1660_v14, %v1697_v34  ;;  %v1704_v24 = vsub.f32 %v1663_v17, %v1697_v34  ;;  %v1705_v46 = vsub.f32 %v1666_v20, %v1697_v34  ;;  %v1808_v34 = vpop.permute.xlu0 %1807 }
 0x2df   : > { %v1706_v38 = vmul.f32 %v3130_v35, %v3130_v35  ;;  %v1707_v26 = vmul.f32 %v3132_v27, %v3132_v27  ;;  %v1708_v40 = vmul.f32 %v3134_v36, %v3134_v36  ;;  %v1709_v42 = vmul.f32 %v1701_v37, %v1701_v37 }
 0x2e0   : > { %v1710_v44 = vmul.f32 %v1702_v39, %v1702_v39  ;;  %v1711_v47 = vmul.f32 %v1703_v25, %v1703_v25  ;;  %v1712_v49 = vmul.f32 %v1704_v24, %v1704_v24  ;;  %v1713_v51 = vmul.f32 %v1705_v46, %v1705_v46 }
 0x2e1   : > { %v1714_v41 = vadd.f32 %v1707_v26, %v1706_v38 }
 0x2e3   : > { %v1715_v43 = vadd.f32 %v1714_v41, %v1708_v40 }
 0x2e5   : > { %v1716_v45 = vadd.f32 %v1715_v43, %v1709_v42  ;;  %v1765_v8 = vpop.permute.xlu1 %1764  ;;  %v1818_v10 = vpop.permute.xlu2 %1817 }
 0x2e7   : > { %v1717_v48 = vadd.f32 %v1716_v45, %v1710_v44 }
 0x2e9   : > { %v1718_v50 = vadd.f32 %v1717_v48, %v1711_v47 }
 0x2eb   : > { %v1719_v52 = vadd.f32 %v1718_v50, %v1712_v49  ;;  %v1798_v50 = vpop.permute.xlu0 %1797 }
 0x2ed   : > { %v1720_v53 = vadd.f32 %v1719_v52, %v1713_v51  ;;  %v1813_v19 = vpop.permute.xlu1 %1812  ;;  %v1755_v29 = vpop.permute.xlu2 %1754 }
 0x2ef   : > { %v1721_v55 = vrot.slane %v1720_v53, 4 }
 0x2f1   : > { %v1722_v56 = vadd.f32 %v1721_v55, %v1720_v53  ;;  %v1881_v55 = vld [vmem:[%s1057_s2] sm:$0x1f] }
 0x2f3   : > { %v1723_v57 = vrot.slane %v1722_v56, 2 }
 0x2f5   : > { %v1724_v59 = vadd.f32 %v1723_v57, %v1722_v56  ;;  %v1750_v45 = vpop.permute.xlu1 %1749  ;;  %v1803_v48 = vpop.permute.xlu2 %1802 }
 0x2f7   : > { %v1725_v62 = vrot.slane %v1724_v59, 1 }
 0x2f9   : > { %v1726_v0 = vadd.f32 %v1725_v62, %v1724_v59 }
 0x2fb   : > { %v1727_v1 = vmul.f32 %v1726_v0, %v3092_v21 }
 0x2fd   : > { %v1728_v2 = vadd.f32 1e-05, %v1727_v1  ;;  %v1886_v57 = vpop.permute.xlu1 %1885 }
 0x2ff   : > { %2500 = vrsqrt.f32 %v1728_v2  ;;  %vm1735_vm12 = vweird.f32 %v1728_v2 }
 0x305   : > { %v2501_v6 = vpop.eup %2500 }
 0x306   : > { %v1730_v7 = vmul.f32 %v2501_v6, %v1728_v2  ;;  %vm1736_vm11 = vweird.f32 %v2501_v6 }
 0x307   : > { %vm1737_vm13 = vmor %vm1735_vm12, %vm1736_vm11 }
 0x308   : > { %v1731_v9 = vmul.f32 %v2501_v6, %v1730_v7  ;;  %v1119_v7 = vpop.permute.xlu2 %1118 }
 0x30a   : > { %v1732_v11 = vmul.f32 0.5, %v1731_v9 }
 0x30c   : > { %v1733_v13 = vsub.f32 1.5, %v1732_v11  ;;  %v1142_v11 = vadd.f32 %v3127_v60, %v1119_v7 }
 0x30e   : > { %v1734_v14 = vmul.f32 %v2501_v6, %v1733_v13 }
 0x310   : > { %v1738_v15 = vsel %vm1737_vm13, %v2501_v6, %v1734_v14  ;;  %v1856_v6 = vpop.permute.xlu0 %1855 }
 0x311   : > { %v1744_v16 = vmul.f32 %v1738_v15, %v1703_v25  ;;  %v1746_v21 = vmul.f32 %v1738_v15, %v1705_v46  ;;  %v1745_v17 = vmul.f32 %v1738_v15, %v1704_v24  ;;  %v1743_v18 = vmul.f32 %v1738_v15, %v1702_v39 }
 0x312   : > { %v1742_v28 = vmul.f32 %v1738_v15, %v1701_v37  ;;  %v1741_v33 = vmul.f32 %v1738_v15, %v3134_v36  ;;  %v1740_v41 = vmul.f32 %v1738_v15, %v3132_v27  ;;  %v1739_v43 = vmul.f32 %v1738_v15, %v3130_v35 }
 0x313   : > { %v1794_v20 = vmul.f32 %v1785_v54, %v1746_v21  ;;  %v1793_v22 = vmul.f32 %v1780_v58, %v1745_v17  ;;  %v1792_v23 = vmul.f32 %v1775_v63, %v1744_v16  ;;  %v1791_v30 = vmul.f32 %v1770_v4, %v1743_v18  ;;  %v1851_v54 = vld [vmem:[%s3335_s29] sm:$0x1f] }
 0x314   : > { %v1790_v40 = vmul.f32 %v1765_v8, %v1742_v28  ;;  %v1789_v42 = vmul.f32 %v1760_v12, %v1741_v33  ;;  %v1788_v44 = vmul.f32 %v1755_v29, %v1740_v41  ;;  %v1787_v47 = vmul.f32 %v1750_v45, %v1739_v43 }
 0x315   : > { %v1842_v31 = vadd.f32 %v1833_v61, %v1794_v20  ;;  %v1841_v32 = vadd.f32 %v1828_v3, %v1793_v22  ;;  %v1840_v26 = vadd.f32 %v1823_v5, %v1792_v23  ;;  %v1839_v39 = vadd.f32 %v1818_v10, %v1791_v30 }
 0x316   : > { %v1838_v24 = vadd.f32 %v1813_v19, %v1790_v40  ;;  %v1837_v46 = vadd.f32 %v1808_v34, %v1789_v42  ;;  %v1836_v27 = vadd.f32 %v1803_v48, %v1788_v44  ;;  %v1835_v52 = vadd.f32 %v1798_v50, %v1787_v47 }
 0x317   : > { %v1850_v38 = vmax.f32 %v1842_v31, 0.0  ;;  %v1849_v25 = vmax.f32 %v1841_v32, 0.0  ;;  %v1848_v37 = vmax.f32 %v1840_v26, 0.0  ;;  %v1847_v36 = vmax.f32 %v1839_v39, 0.0 }
 0x318   : > { %v1846_v49 = vmax.f32 %v1838_v24, 0.0  ;;  %v1845_v51 = vmax.f32 %v1837_v46, 0.0  ;;  %v1844_v35 = vmax.f32 %v1836_v27, 0.0  ;;  %v1843_v53 = vmax.f32 %v1835_v52, 0.0 }
 0x319   : > { %1869 = vmatpush.msra.mxu1 %v1850_v38 }
 0x31b   : > { %1870 = vmatpush.msra.mxu1 %v1849_v25 }
 0x31d   : > { %1871 = vmatpush.msra.mxu1 %v1848_v37 }
 0x31f   : > { %1872 = vmatpush.msra.mxu1 %v1847_v36 }
 0x321   : > { %1873 = vmatpush.msra.mxu1 %v1846_v49 }
 0x323   : > { %1874 = vmatpush.msra.mxu1 %v1845_v51 }
 0x325   : > { %1875 = vmatpush.msra.mxu1 %v1844_v35 }
 0x327   : > { %1876 = vmatpush.msra.mxu1 %v1843_v53 }
 0x328   : > { %2380 = vmatmul.msk.f32.vlgmr.msra.gmra.mxu1 %vm1602_vm10, %v1851_v54 }
 0x329   : > { %1899 = vmatpush.msrb.mxu1 %v1850_v38 }
 0x32b   : > { %1900 = vmatpush.msrb.mxu1 %v1849_v25 }
 0x32d   : > { %1901 = vmatpush.msrb.mxu1 %v1848_v37 }
 0x32f   : > { %1902 = vmatpush.msrb.mxu1 %v1847_v36 }
 0x331   : > { %1903 = vmatpush.msrb.mxu1 %v1846_v49 }
 0x333   : > { %1904 = vmatpush.msrb.mxu1 %v1845_v51 }
 0x335   : > { %1905 = vmatpush.msrb.mxu1 %v1844_v35 }
 0x337   : > { %1906 = vmatpush.msrb.mxu1 %v1843_v53 }
 0x338   : > { %2381 = vmatmul.msk.f32.vlgmr.msrb.gmra.mxu1 %vm1602_vm10, %v1881_v55 }
 0x3a5   : > { %v1878_v56 = vpop.f32.mrf.mxu1 }
 0x3a6   : > { %v1879_v8 = vadd.f32 %v1878_v56, %v1856_v6 }
 0x3a8   : > { %v1931_v14 = vadd.f32 %v1879_v8, %v1142_v11 }
 0x3b5   : > { %v1908_v58 = vpop.f32.mrf.mxu1 }
 0x3b6   : > { %v1909_v59 = vadd.f32 %v1908_v58, %v1886_v57 }
 0x3b8   : > { %v2382_v61 = vmul.f32 -1.442695, %v1909_v59 }
 0x3ba   : > { %2502 = vpow2.f32 %v2382_v61 }
 0x3c0   : > { %v2503_v62 = vpop.eup %2502 }
 0x3c1   : > { %v1914_v63 = vadd.f32 1.0, %v2503_v62 }
 0x3c3   : > { %2504 = vrcp.f32 %v1914_v63  ;;  %v1926_v3 = vand.u32 2147483648, %v1914_v63  ;;  %v1924_v5 = vand.u32 2147483647, %v1914_v63  ;;  %vm1920_vm15 = vweird.f32 %v1914_v63 }
 0x3c5   : > { %v1927_v10 = vor.u32 1.1754944e-38, %v1926_v3  ;;  %vm1925_vm1 = vcmp.eq.f32.partialorder %v1924_v5, 8.507059e+37 }
 0x3c9   : > { %v2505_v0 = vpop.eup %2504 }
 0x3ca   : > { %v1916_v1 = vmul.f32 %v2505_v0, %v1914_v63  ;;  %vm1921_vm14 = vweird.f32 %v2505_v0 }
 0x3cb   : > { %vm1922_vm0 = vmor %vm1920_vm15, %vm1921_vm14 }
 0x3cc   : > { %v1917_v2 = vsub.f32 1.0, %v1916_v1 }
 0x3ce   : > { %v1918_v4 = vmul.f32 %v2505_v0, %v1917_v2 }
 0x3d0   : > { %v1919_v9 = vadd.f32 %v2505_v0, %v1918_v4 }
 0x3d2   : > { %v1923_v12 = vsel %vm1922_vm0, %v2505_v0, %v1919_v9 }
 0x3d3   : > { %v1928_v13 = vsel %vm1925_vm1, %v1927_v10, %v1923_v12 }
 0x3d4   : > { %v1930_v15 = vadd.f32 1e-06, %v1928_v13 }
 0x3d6   : > { %v1932_v16 = vmul.f32 %v1931_v14, %v1930_v15  ;;  %2506 = vlog2.f32 %v1930_v15 }
 0x3d8   : > { %1934 = vst [vmem:[%s2968_s28 + $0x4] sm:$0x1f] %v1932_v16 }
 0x3d9   : > { %2563 = shalt.err (!%p2560_p13)
}
 0x3da   : > { %s2674_s28 = smov 128   ;;  %s2675_s21 = smov 256   ;;  %v1935_v28 = vld [vmem:[%s2971_s20] sm:$0x1] }
 0x3db   : > { %s2676_s0 = smov 8   ;;  %s3340_s17 = sld [smem:[#allocation49_spill]] }
 0x3dc   : > { %2408 = dma.vmem_to_hbm [thread:$0]  (%p2845_p10), %s1964_s10, 256, %s1966_s15, %s1948_s13, %s2674_s28, %s2675_s21, %s2676_s0   ;;  %v2507_v60 = vpop.eup %2506 }
 0x3dd   : > { %v1937_v21 = vmul.f32 0.6931472, %v2507_v60  ;;  %s1979_s3 = sshll.u32 %s2971_s20, 4  ;;  %s1953_s27 = scalar_lea.sflag [#allocation8], %s2874_s12  ;;  %s1980_s3 = int_to_ptr.vmem [resolvable:$true] %s1979_s3 }
 0x3df   : > { %v1938_v17 = vsel %vm1185_vm2, %v1937_v21, 0.0 }
 0x3e0   : > { %v1939_v18 = vrot.slane %v1938_v17, 4 }
 0x3e1   : > { %s1977_s14 = scalar_lea.hbm %s3340_s17, %s3337_s7  ;;  %s2584_s7 = scalar_lea.hbm %s3340_s17, 2 }
 0x3e2   : > { %v1940_v19 = vadd.f32 %v1939_v18, %v1938_v17  ;;  %s1981_s29 = sshll.u32 %s1977_s14, 4  ;;  %s1982_s29 = int_to_ptr.hbm [resolvable:$true] %s1981_s29 }
 0x3e3   : > { %s2578_s1 = sshra.s32 %s1982_s29, 4  ;;  %s2579_s1 = int_to_ptr.hbm [resolvable:$true] %s2578_s1 }
 0x3e4   : > { %v1941_v20 = vrot.slane %v1940_v19, 2  ;;  %s2580_s6 = scalar_lea.hbm %s2579_s1, 1  ;;  %p2585_p3 = scmp.lt.s32.totalorder %s2579_s1, %s3340_s17 }
 0x3e5   : > { %p2581_p0 = scmp.ne.s32.totalorder %s2579_s1, %s2580_s6  ;;  %p2586_p4 = scmp.lt.s32.totalorder %s2584_s7, %s2580_s6 }
 0x3e6   : > { %v1942_v22 = vadd.f32 %v1941_v20, %v1940_v19 }
 0x3e7   : > { %p2582_p1 = pnand %p2581_p0, %p2845_p10  ;;  %p2587_p5 = por %p2586_p4, %p2585_p3 }
 0x3e8   : > { %v1943_v23 = vrot.slane %v1942_v22, 1 }
 0x3e9   : > { %p2583_p2 = pneg %p2582_p1 }
 0x3ea   : > { %v1944_v29 = vadd.f32 %v1943_v23, %v1942_v22 }
 0x3eb   : > { %p2588_p6 = pnand %p2587_p5, %p2583_p2 }
 0x3ec   : > { %v1945_v31 = vadd.f32 %v1944_v29, %v1935_v28 }
 0x3ee   : > { %1946 = vst [vmem:[%s2971_s20] sm:$0x1] %v1945_v31 }
 0x3ef   : > { %2591 = shalt.err (!%p2588_p6)
}
 0x3f0   : > { %2409 = dma.vmem_to_hbm [thread:$0]  (%p2845_p10), %s1980_s3, 16, %s1982_s29, %s1953_s27  }
 0x3f1 PF: > { %s3341_s12 = sld [smem:[#allocation19_spill]] }
 0x3f2   : > { %s3342_s20 = sld [smem:[#allocation12_spill]] }
 0x3f7   : > { %p2419_p7 = scmp.ge.s32.totalorder %s3341_s12, 2 }
 0x3f8   : > { %s1993_s15 = sand.u32 1, %s3342_s20  }
 0x3f9   : > { %p2413_p8 = pnand %p2419_p7, %p2851_p11  ;;  %s1994_s13 = scalar_lea.sflag [#allocation4], %s1993_s15 }
 0x3fb   : > { %p2414_p9 = pneg %p2413_p8 }
 0x3fd   : > { %2629 = dma.done.wait (%p2414_p9), %s1994_s13, 256  }
 0x3fe   : > { %2631 = vsyncadd (%p2414_p9), %s1994_s13, 4294967040  ;;  %s2004_s19 = scalar_lea.sflag [#allocation8], %s1993_s15 }
 0x3ff   : > { %2633 = dma.done.wait (%p2414_p9), %s2004_s19, 16  }
 0x400   : > { %2635 = vsyncadd (%p2414_p9), %s2004_s19, 4294967280  ;;  %s40_s26 = sadd.s32 1, %s3341_s12   ;;  %s3344_s1 = sld [smem:[#allocation13_spill]] }
 0x401   : > { %p37_p12 = scmp.ge.s32.totalorder %s40_s26, 10   ;;  %s3345_s22 = sld [smem:[#allocation14_spill]] }
 0x402   : > { %s3346_s23 = sld [smem:[#allocation24_spill]] }
 0x403   : > { %s3347_s24 = sld [smem:[#allocation17_spill]]  ;;  %39 = sbr.rel (!%p37_p12) target bundleno = 31 (0x1f), region = 259 }
 0x404   : > { %s3348_s2 = sld [smem:[#allocation18_spill]] }
 0x405   : > { %s3349_s25 = sld [smem:[#allocation20_spill]] }
 0x406   : > { %s3350_s3 = sld [smem:[#allocation21_spill]] }
 0x408   :  { %2009 = vsyncpa [#allocation3], 1 }
 0x409   :  { %2011 = vsyncpa [#allocation3 + $0x1], 1 }
 0x40a   :  { %2012 = vsyncpa [#allocation4], 1 }
 0x40b   :  { %2014 = vsyncpa [#allocation4 + $0x1], 1 }
 0x40c   :  { %2015 = vsyncpa [#allocation8], 1 }
 0x40d   :  { %2017 = vsyncpa [#allocation8 + $0x1], 1 }

</bundles_post_ra>
